<compile_context>
chip_gen: v6e
topology: v6e:2x2x1
jax: 0.10.0
libtpu: 0.0.40
codegen_flags: <defaults>
</compile_context>

<pallas_src>
import functools

import jax
import jax.numpy as jnp
from jax.experimental import pallas as pl
from jax.experimental.pallas import tpu as pltpu

LANE = 128  # TPU lane width; output channels are padded to a multiple of this.


def _round_up(x, m):
    return (x + m - 1) // m * m


# --------------------------------------------------------------------------
# Fused Pallas kernel: one residual block, one image per grid step.
# --------------------------------------------------------------------------
def _block_kernel(x_ref, w1_ref, b1_ref, w2_ref, b2_ref, *rest,
                  stride, ho, wo, cin, cp, projection):
    """Refs (per grid step):
       x_ref   (1, s*s, Hp, Wp, cin)  phase-split, spatially padded input (bf16)
       w1_ref  (9, cin, cp)           conv1 weights per tap, BN1 scale folded (bf16)
       b1_ref  (1, cp)                BN1 bias (f32)
       w2_ref  (9, cp, cp)            conv2 weights per tap, BN2 scale folded (bf16)
       b2_ref  (1, cp)                BN2 bias (f32)
       [projection only]
       wsc_ref (cin, cp)              1x1 shortcut weights (BNsc folded) (bf16)
       bsc_ref (1, cp)                shortcut bias (f32)
       --
       o_ref   (1, ho, wo, cp)        block output (f32)
       y1_ref  (ho+2, wo+2, cp)       VMEM scratch: zero-halo tile holding conv1's output
    """
    if projection:
        wsc_ref, bsc_ref, o_ref, y1_ref = rest
    else:
        o_ref, y1_ref = rest

    s = stride
    m = ho * wo

    # Zero the y1 halo tile; its border is conv2's zero padding.
    y1_ref[...] = jnp.zeros_like(y1_ref)

    # ---- conv1: 3x3 / stride s + folded BN1 + ReLU (9 accumulated MXU matmuls) ----
    acc1 = jnp.zeros((m, cp), jnp.float32)
    for kh in range(3):
        for kw in range(3):
            p = (kh % s) * s + (kw % s)        # phase plane holding this tap
            dh, dw = kh // s, kw // s          # offset inside that phase plane
            tap = x_ref[0, p, dh:dh + ho, dw:dw + wo, :].reshape(m, cin)
            acc1 = acc1 + jnp.dot(tap, w1_ref[kh * 3 + kw],
                                  preferred_element_type=jnp.float32)
    y1 = jnp.maximum(acc1 + b1_ref[...], 0.0)
    y1_ref[1:ho + 1, 1:wo + 1, :] = y1.reshape(ho, wo, cp).astype(y1_ref.dtype)

    # ---- shortcut ----
    psc = (1 % s) * s + (1 % s)
    dsc = 1 // s
    xs = x_ref[0, psc, dsc:dsc + ho, dsc:dsc + wo, :].reshape(m, cin)
    if projection:
        # 1x1 stride-s conv + folded BNsc (one MXU matmul).
        acc = (jnp.dot(xs, wsc_ref[...], preferred_element_type=jnp.float32)
               + bsc_ref[...])
    else:
        # Identity shortcut: plain copy (lane-padded to cp); no matmul, no weights.
        acc = xs.astype(jnp.float32)
        if cp > cin:
            acc = jnp.concatenate(
                [acc, jnp.zeros((m, cp - cin), jnp.float32)], axis=-1)

    # ---- conv2: 3x3 / stride 1 + folded BN2, accumulated over the y1 halo tile ----
    for kh in range(3):
        for kw in range(3):
            tap = y1_ref[kh:kh + ho, kw:kw + wo, :].reshape(m, cp)
            acc = acc + jnp.dot(tap, w2_ref[kh * 3 + kw],
                                preferred_element_type=jnp.float32)

    # residual add is already included (the shortcut seeded `acc`); final block ReLU
    out = jnp.maximum(acc + b2_ref[...], 0.0)
    o_ref[0] = out.reshape(ho, wo, cp).astype(o_ref.dtype)


# --------------------------------------------------------------------------
# Wrapper glue (plain JAX): BN folding, channel padding, phase split, pallas_call.
# --------------------------------------------------------------------------
def _fold_bn(gamma, beta, mean, var, eps=1e-5):
    scale = gamma / jnp.sqrt(var + eps)
    return scale, beta - mean * scale


def _phase_split(xpad, stride, ho, wo):
    """Rearrange the padded NHWC input so every conv tap is a contiguous slice.

    Returns (N, stride*stride, Hp, Wp, C) with
      out[:, a*stride + b, i, j] == xpad[:, a + stride*i, b + stride*j].
    Total data volume is unchanged (no im2col inflation)."""
    hp = ho + 2 // stride
    wp = wo + 2 // stride
    planes = []
    for a in range(stride):
        for b in range(stride):
            p = xpad[:, a::stride, b::stride, :]
            pad_h = max(0, hp - p.shape[1])
            pad_w = max(0, wp - p.shape[2])
            p = jnp.pad(p, ((0, 0), (0, pad_h), (0, pad_w), (0, 0)))[:, :hp, :wp, :]
            planes.append(p)
    return jnp.stack(planes, axis=1)


def basic_block_forward(x_nchw, params, stride):
    """Pallas implementation of BasicBlockWOutput.only_forward -> (out_nchw, 0, None)."""
    w1, bn1, w2, bn2, wsc, bnsc = params
    x = jnp.transpose(x_nchw, (0, 2, 3, 1)).astype(jnp.float32)   # NCHW -> NHWC
    n, h, w, cin = x.shape
    cmid = w1.shape[-1]
    ho = (h + 2 - 3) // stride + 1
    wo = (w + 2 - 3) // stride + 1
    cp = _round_up(cmid, LANE)          # lane-dense output channel count
    projection = (stride != 1 or cin != cmid)

    # Fold eval-mode BatchNorm: scale goes into the weights, bias stays separate.
    s1, b1 = _fold_bn(*bn1)
    s2, b2 = _fold_bn(*bn2)
    w1f = (w1 * s1).reshape(9, cin, cmid)          # (3,3,cin,cmid) -> per-tap matrices
    w2f = (w2 * s2).reshape(9, cmid, cmid)

    pc = cp - cmid
    w1p = jnp.pad(w1f, ((0, 0), (0, 0), (0, pc))).astype(jnp.bfloat16)
    w2p = jnp.pad(w2f, ((0, 0), (0, pc), (0, pc))).astype(jnp.bfloat16)
    b1p = jnp.pad(b1, (0, pc)).reshape(1, cp).astype(jnp.float32)
    b2p = jnp.pad(b2, (0, pc)).reshape(1, cp).astype(jnp.float32)

    xpad = jnp.pad(x, ((0, 0), (1, 1), (1, 1), (0, 0)))
    xph = _phase_split(xpad, stride, ho, wo).astype(jnp.bfloat16)
    nph, hp, wp = xph.shape[1], xph.shape[2], xph.shape[3]

    operands = [xph, w1p, b1p, w2p, b2p]
    in_specs = [
        pl.BlockSpec((1, nph, hp, wp, cin), lambda i: (i, 0, 0, 0, 0)),
        pl.BlockSpec((9, cin, cp), lambda i: (0, 0, 0)),
        pl.BlockSpec((1, cp), lambda i: (0, 0)),
        pl.BlockSpec((9, cp, cp), lambda i: (0, 0, 0)),
        pl.BlockSpec((1, cp), lambda i: (0, 0)),
    ]
    if projection:                                 # projection shortcut (1x1 conv + BN)
        ssc, bsc = _fold_bn(*bnsc)
        wscf = wsc.reshape(cin, cmid) * ssc
        wscp = jnp.pad(wscf, ((0, 0), (0, pc))).astype(jnp.bfloat16)
        bscp = jnp.pad(bsc, (0, pc)).reshape(1, cp).astype(jnp.float32)
        operands += [wscp, bscp]
        in_specs += [pl.BlockSpec((cin, cp), lambda i: (0, 0)),
                     pl.BlockSpec((1, cp), lambda i: (0, 0))]

    kernel = functools.partial(_block_kernel, stride=stride, ho=ho, wo=wo,
                               cin=cin, cp=cp, projection=projection)

    out = pl.pallas_call(
        kernel,
        out_shape=jax.ShapeDtypeStruct((n, ho, wo, cp), jnp.float32),
        grid=(n,),
        in_specs=in_specs,
        out_specs=pl.BlockSpec((1, ho, wo, cp), lambda i: (i, 0, 0, 0)),
        scratch_shapes=[pltpu.VMEM((ho + 2, wo + 2, cp), jnp.bfloat16)],
        compiler_params=pltpu.CompilerParams(
            dimension_semantics=("parallel",),      # megacore sharding on v7x
            vmem_limit_bytes=48 * 1024 * 1024,      # explicit cap; safe on 64 MiB v7x VMEM
        ),
    )(*operands)

    out = out[..., :cmid]                              # drop lane padding
    return jnp.transpose(out, (0, 3, 1, 2)), 0, None   # only_forward -> (out, 0, None)


# --------------------------------------------------------------------------
# Pure-JAX reference (lax convs) for correctness checks.
# --------------------------------------------------------------------------
def reference_forward(x_nchw, params, stride, *, op_dtype=jnp.float32):
    """Reference of only_forward with eval-mode BN folded into the weights.

    op_dtype=bfloat16 mirrors the kernel's operand rounding (bf16 folded weights /
    activations, f32 accumulation) for a tight check; float32 is the unquantized
    semantic reference."""
    w1, bn1, w2, bn2, wsc, bnsc = params
    x = jnp.transpose(x_nchw, (0, 2, 3, 1)).astype(jnp.float32)
    cin, cmid = x.shape[-1], w1.shape[-1]
    s1, b1 = _fold_bn(*bn1)
    s2, b2 = _fold_bn(*bn2)

    def conv(a, wgt, s, pad):
        return jax.lax.conv_general_dilated(
            a.astype(op_dtype), wgt.astype(op_dtype), (s, s),
            [(pad, pad), (pad, pad)],
            dimension_numbers=("NHWC", "HWIO", "NHWC"),
            preferred_element_type=jnp.float32)

    y = jnp.maximum(conv(x, w1 * s1, stride, 1) + b1, 0.0)
    y = conv(y, w2 * s2, 1, 1) + b2
    if stride != 1 or cin != cmid:
        ssc, bsc = _fold_bn(*bnsc)
        sc = conv(x, wsc * ssc, stride, 0) + bsc
    else:
        sc = x.astype(op_dtype)[:, ::stride, ::stride, :].astype(jnp.float32)
    out = jnp.maximum(y + sc, 0.0)
    return jnp.transpose(out, (0, 3, 1, 2))


# --------------------------------------------------------------------------
def _make_params(key, cin, cmid, *, projection):
    ks = jax.random.split(key, 16)

    def bn(k0, k1, k2, k3, c):
        return (jax.random.uniform(k0, (c,), minval=0.8, maxval=1.2),   # gamma
                jax.random.normal(k1, (c,)) * 0.1,                      # beta
                jax.random.normal(k2, (c,)) * 0.1,                      # running mean
                jax.random.uniform(k3, (c,), minval=0.5, maxval=1.5))   # running var

    w1 = jax.random.normal(ks[0], (3, 3, cin, cmid)) * 0.1    # (kh,kw,Cin,Cout)
    bn1 = bn(ks[1], ks[2], ks[3], ks[4], cmid)
    w2 = jax.random.normal(ks[5], (3, 3, cmid, cmid)) * 0.1
    bn2 = bn(ks[6], ks[7], ks[8], ks[9], cmid)
    if projection:
        wsc = jax.random.normal(ks[10], (1, 1, cin, cmid)) * 0.1
        bnsc = bn(ks[11], ks[12], ks[13], ks[14], cmid)
    else:
        wsc, bnsc = None, None
    return (w1, bn1, w2, bn2, wsc, bnsc)


if __name__ == "__main__":
    key = jax.random.PRNGKey(0)
    k_cases = jax.random.split(key, 4)

    # case 1: stride-2 block with projection shortcut (in_channels != channels)
    # case 2: stride-1 block with identity shortcut  (in_channels == channels)
    cases = [
        dict(n=2, cin=4, cmid=8, h=16, w=16, stride=2),
        dict(n=2, cin=8, cmid=8, h=16, w=16, stride=1),
    ]

    for ci, cfg in enumerate(cases):
        n, cin, cmid = cfg["n"], cfg["cin"], cfg["cmid"]
        h, w, stride = cfg["h"], cfg["w"], cfg["stride"]
        projection = (stride != 1 or cin != cmid)
        params = _make_params(k_cases[2 * ci], cin, cmid, projection=projection)
        x = jax.random.normal(k_cases[2 * ci + 1], (n, cin, h, w), dtype=jnp.float32)

        out, flag, head = basic_block_forward(x, params, stride)
        out = jax.block_until_ready(out)
        assert out.shape == (n, cmid, h // stride, w // stride), out.shape
        assert flag == 0 and head is None

        ref_q = reference_forward(x, params, stride, op_dtype=jnp.bfloat16)
        ref_f = reference_forward(x, params, stride, op_dtype=jnp.float32)
        err_q = float(jnp.max(jnp.abs(out - ref_q)))   # same quantization as the kernel
        err_f = float(jnp.max(jnp.abs(out - ref_f)))   # unquantized f32 semantics
        assert err_q < 3e-2, (ci, err_q)
        assert err_f < 2e-1, (ci, err_f)

    print("KERNEL_OK")
</pallas_src>

<mosaic_0001>
module attributes {stable_mosaic.version = 11 : i64} {
  func.func @_block_kernel(%arg0: i32, %arg1: memref<1x4x9x9x4xbf16, #tpu.memory_space<vmem>>, %arg2: memref<9x4x128xbf16, #tpu.memory_space<vmem>>, %arg3: memref<1x128xf32, #tpu.memory_space<vmem>>, %arg4: memref<9x128x128xbf16, #tpu.memory_space<vmem>>, %arg5: memref<1x128xf32, #tpu.memory_space<vmem>>, %arg6: memref<4x128xbf16, #tpu.memory_space<vmem>>, %arg7: memref<1x128xf32, #tpu.memory_space<vmem>>, %arg8: memref<1x8x8x128xf32, #tpu.memory_space<vmem>>, %arg9: memref<10x10x128xbf16, #tpu.memory_space<vmem>>) attributes {dimension_semantics = [#tpu.dimension_semantics<parallel>], iteration_bounds = array<i64: 2>, scalar_prefetch = 0 : i64, scratch_operands = 1 : i64, tpu.core_type = #tpu.core_type<tc>, window_params = [{transform_indices = @transform_0, window_bounds = array<i64: 1, 4, 9, 9, 4>}, {pipeline_mode = #tpu.pipeline_mode<synchronous>, transform_indices = @transform_1, window_bounds = array<i64: 9, 4, 128>}, {pipeline_mode = #tpu.pipeline_mode<synchronous>, transform_indices = @transform_2, window_bounds = array<i64: 1, 128>}, {pipeline_mode = #tpu.pipeline_mode<synchronous>, transform_indices = @transform_3, window_bounds = array<i64: 9, 128, 128>}, {pipeline_mode = #tpu.pipeline_mode<synchronous>, transform_indices = @transform_4, window_bounds = array<i64: 1, 128>}, {pipeline_mode = #tpu.pipeline_mode<synchronous>, transform_indices = @transform_5, window_bounds = array<i64: 4, 128>}, {pipeline_mode = #tpu.pipeline_mode<synchronous>, transform_indices = @transform_6, window_bounds = array<i64: 1, 128>}, {transform_indices = @transform_7, window_bounds = array<i64: 1, 8, 8, 128>}]} {
    %cst = arith.constant 0.000000e+00 : bf16
    %0 = vector.broadcast %cst : bf16 to vector<10x10x128xbf16>
    %c0 = arith.constant 0 : index
    %c0_0 = arith.constant 0 : index
    %c0_1 = arith.constant 0 : index
    %1 = vector.load %arg9[%c0, %c0_0, %c0_1] : memref<10x10x128xbf16, #tpu.memory_space<vmem>>, vector<10x10x128xbf16>
    tpu.vector_store %arg9[%c0, %c0_0, %c0_1], %0 {strides = array<i32>} : memref<10x10x128xbf16, #tpu.memory_space<vmem>>, vector<10x10x128xbf16>,
    %cst_2 = arith.constant 0.000000e+00 : f32
    %2 = vector.broadcast %cst_2 : f32 to vector<64x128xf32>
    %c0_3 = arith.constant 0 : index
    %c0_4 = arith.constant 0 : index
    %c0_5 = arith.constant 0 : index
    %c0_6 = arith.constant 0 : index
    %c0_7 = arith.constant 0 : index
    %3 = vector.load %arg1[%c0_3, %c0_4, %c0_5, %c0_6, %c0_7] : memref<1x4x9x9x4xbf16, #tpu.memory_space<vmem>>, vector<1x1x8x8x4xbf16>
    %4 = vector.shape_cast %3 : vector<1x1x8x8x4xbf16> to vector<8x8x4xbf16>
    %5 = vector.shape_cast %4 : vector<8x8x4xbf16> to vector<64x4xbf16>
    %c0_8 = arith.constant 0 : index
    %c0_9 = arith.constant 0 : index
    %c0_10 = arith.constant 0 : index
    %6 = vector.load %arg2[%c0_8, %c0_9, %c0_10] : memref<9x4x128xbf16, #tpu.memory_space<vmem>>, vector<1x4x128xbf16>
    %7 = vector.shape_cast %6 : vector<1x4x128xbf16> to vector<4x128xbf16>
    %cst_11 = arith.constant dense<0.000000e+00> : vector<64x128xf32>
    %8 = tpu.matmul %5, %7, %cst_11 {dimension_numbers = #tpu.dot_dimension_numbers<[1], [0], [0], [1], [0, 0, 1, 1], [], []>} : vector<64x4xbf16>, vector<4x128xbf16>, vector<64x128xf32> -> vector<64x128xf32>
    %9 = arith.addf %2, %8 : vector<64x128xf32>
    %c0_12 = arith.constant 0 : index
    %c1 = arith.constant 1 : index
    %c0_13 = arith.constant 0 : index
    %c0_14 = arith.constant 0 : index
    %c0_15 = arith.constant 0 : index
    %10 = vector.load %arg1[%c0_12, %c1, %c0_13, %c0_14, %c0_15] : memref<1x4x9x9x4xbf16, #tpu.memory_space<vmem>>, vector<1x1x8x8x4xbf16>
    %11 = vector.shape_cast %10 : vector<1x1x8x8x4xbf16> to vector<8x8x4xbf16>
    %12 = vector.shape_cast %11 : vector<8x8x4xbf16> to vector<64x4xbf16>
    %c1_16 = arith.constant 1 : index
    %c0_17 = arith.constant 0 : index
    %c0_18 = arith.constant 0 : index
    %13 = vector.load %arg2[%c1_16, %c0_17, %c0_18] : memref<9x4x128xbf16, #tpu.memory_space<vmem>>, vector<1x4x128xbf16>
    %14 = vector.shape_cast %13 : vector<1x4x128xbf16> to vector<4x128xbf16>
    %cst_19 = arith.constant dense<0.000000e+00> : vector<64x128xf32>
    %15 = tpu.matmul %12, %14, %cst_19 {dimension_numbers = #tpu.dot_dimension_numbers<[1], [0], [0], [1], [0, 0, 1, 1], [], []>} : vector<64x4xbf16>, vector<4x128xbf16>, vector<64x128xf32> -> vector<64x128xf32>
    %16 = arith.addf %9, %15 : vector<64x128xf32>
    %c0_20 = arith.constant 0 : index
    %c0_21 = arith.constant 0 : index
    %c0_22 = arith.constant 0 : index
    %c1_23 = arith.constant 1 : index
    %c0_24 = arith.constant 0 : index
    %17 = vector.load %arg1[%c0_20, %c0_21, %c0_22, %c1_23, %c0_24] : memref<1x4x9x9x4xbf16, #tpu.memory_space<vmem>>, vector<1x1x8x8x4xbf16>
    %18 = vector.shape_cast %17 : vector<1x1x8x8x4xbf16> to vector<8x8x4xbf16>
    %19 = vector.shape_cast %18 : vector<8x8x4xbf16> to vector<64x4xbf16>
    %c2 = arith.constant 2 : index
    %c0_25 = arith.constant 0 : index
    %c0_26 = arith.constant 0 : index
    %20 = vector.load %arg2[%c2, %c0_25, %c0_26] : memref<9x4x128xbf16, #tpu.memory_space<vmem>>, vector<1x4x128xbf16>
    %21 = vector.shape_cast %20 : vector<1x4x128xbf16> to vector<4x128xbf16>
    %cst_27 = arith.constant dense<0.000000e+00> : vector<64x128xf32>
    %22 = tpu.matmul %19, %21, %cst_27 {dimension_numbers = #tpu.dot_dimension_numbers<[1], [0], [0], [1], [0, 0, 1, 1], [], []>} : vector<64x4xbf16>, vector<4x128xbf16>, vector<64x128xf32> -> vector<64x128xf32>
    %23 = arith.addf %16, %22 : vector<64x128xf32>
    %c0_28 = arith.constant 0 : index
    %c2_29 = arith.constant 2 : index
    %c0_30 = arith.constant 0 : index
    %c0_31 = arith.constant 0 : index
    %c0_32 = arith.constant 0 : index
    %24 = vector.load %arg1[%c0_28, %c2_29, %c0_30, %c0_31, %c0_32] : memref<1x4x9x9x4xbf16, #tpu.memory_space<vmem>>, vector<1x1x8x8x4xbf16>
    %25 = vector.shape_cast %24 : vector<1x1x8x8x4xbf16> to vector<8x8x4xbf16>
    %26 = vector.shape_cast %25 : vector<8x8x4xbf16> to vector<64x4xbf16>
    %c3 = arith.constant 3 : index
    %c0_33 = arith.constant 0 : index
    %c0_34 = arith.constant 0 : index
    %27 = vector.load %arg2[%c3, %c0_33, %c0_34] : memref<9x4x128xbf16, #tpu.memory_space<vmem>>, vector<1x4x128xbf16>
    %28 = vector.shape_cast %27 : vector<1x4x128xbf16> to vector<4x128xbf16>
    %cst_35 = arith.constant dense<0.000000e+00> : vector<64x128xf32>
    %29 = tpu.matmul %26, %28, %cst_35 {dimension_numbers = #tpu.dot_dimension_numbers<[1], [0], [0], [1], [0, 0, 1, 1], [], []>} : vector<64x4xbf16>, vector<4x128xbf16>, vector<64x128xf32> -> vector<64x128xf32>
    %30 = arith.addf %23, %29 : vector<64x128xf32>
    %c0_36 = arith.constant 0 : index
    %c3_37 = arith.constant 3 : index
    %c0_38 = arith.constant 0 : index
    %c0_39 = arith.constant 0 : index
    %c0_40 = arith.constant 0 : index
    %31 = vector.load %arg1[%c0_36, %c3_37, %c0_38, %c0_39, %c0_40] : memref<1x4x9x9x4xbf16, #tpu.memory_space<vmem>>, vector<1x1x8x8x4xbf16>
    %32 = vector.shape_cast %31 : vector<1x1x8x8x4xbf16> to vector<8x8x4xbf16>
    %33 = vector.shape_cast %32 : vector<8x8x4xbf16> to vector<64x4xbf16>
    %c4 = arith.constant 4 : index
    %c0_41 = arith.constant 0 : index
    %c0_42 = arith.constant 0 : index
    %34 = vector.load %arg2[%c4, %c0_41, %c0_42] : memref<9x4x128xbf16, #tpu.memory_space<vmem>>, vector<1x4x128xbf16>
    %35 = vector.shape_cast %34 : vector<1x4x128xbf16> to vector<4x128xbf16>
    %cst_43 = arith.constant dense<0.000000e+00> : vector<64x128xf32>
    %36 = tpu.matmul %33, %35, %cst_43 {dimension_numbers = #tpu.dot_dimension_numbers<[1], [0], [0], [1], [0, 0, 1, 1], [], []>} : vector<64x4xbf16>, vector<4x128xbf16>, vector<64x128xf32> -> vector<64x128xf32>
    %37 = arith.addf %30, %36 : vector<64x128xf32>
    %c0_44 = arith.constant 0 : index
    %c2_45 = arith.constant 2 : index
    %c0_46 = arith.constant 0 : index
    %c1_47 = arith.constant 1 : index
    %c0_48 = arith.constant 0 : index
    %38 = vector.load %arg1[%c0_44, %c2_45, %c0_46, %c1_47, %c0_48] : memref<1x4x9x9x4xbf16, #tpu.memory_space<vmem>>, vector<1x1x8x8x4xbf16>
    %39 = vector.shape_cast %38 : vector<1x1x8x8x4xbf16> to vector<8x8x4xbf16>
    %40 = vector.shape_cast %39 : vector<8x8x4xbf16> to vector<64x4xbf16>
    %c5 = arith.constant 5 : index
    %c0_49 = arith.constant 0 : index
    %c0_50 = arith.constant 0 : index
    %41 = vector.load %arg2[%c5, %c0_49, %c0_50] : memref<9x4x128xbf16, #tpu.memory_space<vmem>>, vector<1x4x128xbf16>
    %42 = vector.shape_cast %41 : vector<1x4x128xbf16> to vector<4x128xbf16>
    %cst_51 = arith.constant dense<0.000000e+00> : vector<64x128xf32>
    %43 = tpu.matmul %40, %42, %cst_51 {dimension_numbers = #tpu.dot_dimension_numbers<[1], [0], [0], [1], [0, 0, 1, 1], [], []>} : vector<64x4xbf16>, vector<4x128xbf16>, vector<64x128xf32> -> vector<64x128xf32>
    %44 = arith.addf %37, %43 : vector<64x128xf32>
    %c0_52 = arith.constant 0 : index
    %c0_53 = arith.constant 0 : index
    %c1_54 = arith.constant 1 : index
    %c0_55 = arith.constant 0 : index
    %c0_56 = arith.constant 0 : index
    %45 = vector.load %arg1[%c0_52, %c0_53, %c1_54, %c0_55, %c0_56] : memref<1x4x9x9x4xbf16, #tpu.memory_space<vmem>>, vector<1x1x8x8x4xbf16>
    %46 = vector.shape_cast %45 : vector<1x1x8x8x4xbf16> to vector<8x8x4xbf16>
    %47 = vector.shape_cast %46 : vector<8x8x4xbf16> to vector<64x4xbf16>
    %c6 = arith.constant 6 : index
    %c0_57 = arith.constant 0 : index
    %c0_58 = arith.constant 0 : index
    %48 = vector.load %arg2[%c6, %c0_57, %c0_58] : memref<9x4x128xbf16, #tpu.memory_space<vmem>>, vector<1x4x128xbf16>
    %49 = vector.shape_cast %48 : vector<1x4x128xbf16> to vector<4x128xbf16>
    %cst_59 = arith.constant dense<0.000000e+00> : vector<64x128xf32>
    %50 = tpu.matmul %47, %49, %cst_59 {dimension_numbers = #tpu.dot_dimension_numbers<[1], [0], [0], [1], [0, 0, 1, 1], [], []>} : vector<64x4xbf16>, vector<4x128xbf16>, vector<64x128xf32> -> vector<64x128xf32>
    %51 = arith.addf %44, %50 : vector<64x128xf32>
    %c0_60 = arith.constant 0 : index
    %c1_61 = arith.constant 1 : index
    %c1_62 = arith.constant 1 : index
    %c0_63 = arith.constant 0 : index
    %c0_64 = arith.constant 0 : index
    %52 = vector.load %arg1[%c0_60, %c1_61, %c1_62, %c0_63, %c0_64] : memref<1x4x9x9x4xbf16, #tpu.memory_space<vmem>>, vector<1x1x8x8x4xbf16>
    %53 = vector.shape_cast %52 : vector<1x1x8x8x4xbf16> to vector<8x8x4xbf16>
    %54 = vector.shape_cast %53 : vector<8x8x4xbf16> to vector<64x4xbf16>
    %c7 = arith.constant 7 : index
    %c0_65 = arith.constant 0 : index
    %c0_66 = arith.constant 0 : index
    %55 = vector.load %arg2[%c7, %c0_65, %c0_66] : memref<9x4x128xbf16, #tpu.memory_space<vmem>>, vector<1x4x128xbf16>
    %56 = vector.shape_cast %55 : vector<1x4x128xbf16> to vector<4x128xbf16>
    %cst_67 = arith.constant dense<0.000000e+00> : vector<64x128xf32>
    %57 = tpu.matmul %54, %56, %cst_67 {dimension_numbers = #tpu.dot_dimension_numbers<[1], [0], [0], [1], [0, 0, 1, 1], [], []>} : vector<64x4xbf16>, vector<4x128xbf16>, vector<64x128xf32> -> vector<64x128xf32>
    %58 = arith.addf %51, %57 : vector<64x128xf32>
    %c0_68 = arith.constant 0 : index
    %c0_69 = arith.constant 0 : index
    %c1_70 = arith.constant 1 : index
    %c1_71 = arith.constant 1 : index
    %c0_72 = arith.constant 0 : index
    %59 = vector.load %arg1[%c0_68, %c0_69, %c1_70, %c1_71, %c0_72] : memref<1x4x9x9x4xbf16, #tpu.memory_space<vmem>>, vector<1x1x8x8x4xbf16>
    %60 = vector.shape_cast %59 : vector<1x1x8x8x4xbf16> to vector<8x8x4xbf16>
    %61 = vector.shape_cast %60 : vector<8x8x4xbf16> to vector<64x4xbf16>
    %c8 = arith.constant 8 : index
    %c0_73 = arith.constant 0 : index
    %c0_74 = arith.constant 0 : index
    %62 = vector.load %arg2[%c8, %c0_73, %c0_74] : memref<9x4x128xbf16, #tpu.memory_space<vmem>>, vector<1x4x128xbf16>
    %63 = vector.shape_cast %62 : vector<1x4x128xbf16> to vector<4x128xbf16>
    %cst_75 = arith.constant dense<0.000000e+00> : vector<64x128xf32>
    %64 = tpu.matmul %61, %63, %cst_75 {dimension_numbers = #tpu.dot_dimension_numbers<[1], [0], [0], [1], [0, 0, 1, 1], [], []>} : vector<64x4xbf16>, vector<4x128xbf16>, vector<64x128xf32> -> vector<64x128xf32>
    %65 = arith.addf %58, %64 : vector<64x128xf32>
    %c0_76 = arith.constant 0 : index
    %c0_77 = arith.constant 0 : index
    %66 = vector.load %arg3[%c0_76, %c0_77] : memref<1x128xf32, #tpu.memory_space<vmem>>, vector<1x128xf32>
    %67 = vector.broadcast %66 : vector<1x128xf32> to vector<64x128xf32>
    %68 = arith.addf %65, %67 : vector<64x128xf32>
    %cst_78 = arith.constant 0.000000e+00 : f32
    %69 = vector.broadcast %cst_78 : f32 to vector<64x128xf32>
    %70 = arith.maximumf %68, %69 : vector<64x128xf32>
    %71 = vector.shape_cast %70 : vector<64x128xf32> to vector<8x8x128xf32>
    %72 = arith.truncf %71 : vector<8x8x128xf32> to vector<8x8x128xbf16>
    %c1_79 = arith.constant 1 : index
    %c1_80 = arith.constant 1 : index
    %c0_81 = arith.constant 0 : index
    %73 = vector.load %arg9[%c1_79, %c1_80, %c0_81] : memref<10x10x128xbf16, #tpu.memory_space<vmem>>, vector<8x8x128xbf16>
    tpu.vector_store %arg9[%c1_79, %c1_80, %c0_81], %72 {strides = array<i32>} : memref<10x10x128xbf16, #tpu.memory_space<vmem>>, vector<8x8x128xbf16>,
    %c0_82 = arith.constant 0 : index
    %c3_83 = arith.constant 3 : index
    %c0_84 = arith.constant 0 : index
    %c0_85 = arith.constant 0 : index
    %c0_86 = arith.constant 0 : index
    %74 = vector.load %arg1[%c0_82, %c3_83, %c0_84, %c0_85, %c0_86] : memref<1x4x9x9x4xbf16, #tpu.memory_space<vmem>>, vector<1x1x8x8x4xbf16>
    %75 = vector.shape_cast %74 : vector<1x1x8x8x4xbf16> to vector<8x8x4xbf16>
    %76 = vector.shape_cast %75 : vector<8x8x4xbf16> to vector<64x4xbf16>
    %c0_87 = arith.constant 0 : index
    %c0_88 = arith.constant 0 : index
    %77 = vector.load %arg6[%c0_87, %c0_88] : memref<4x128xbf16, #tpu.memory_space<vmem>>, vector<4x128xbf16>
    %cst_89 = arith.constant dense<0.000000e+00> : vector<64x128xf32>
    %78 = tpu.matmul %76, %77, %cst_89 {dimension_numbers = #tpu.dot_dimension_numbers<[1], [0], [0], [1], [0, 0, 1, 1], [], []>} : vector<64x4xbf16>, vector<4x128xbf16>, vector<64x128xf32> -> vector<64x128xf32>
    %c0_90 = arith.constant 0 : index
    %c0_91 = arith.constant 0 : index
    %79 = vector.load %arg7[%c0_90, %c0_91] : memref<1x128xf32, #tpu.memory_space<vmem>>, vector<1x128xf32>
    %80 = vector.broadcast %79 : vector<1x128xf32> to vector<64x128xf32>
    %81 = arith.addf %78, %80 : vector<64x128xf32>
    %c0_92 = arith.constant 0 : index
    %c0_93 = arith.constant 0 : index
    %c0_94 = arith.constant 0 : index
    %82 = vector.load %arg9[%c0_92, %c0_93, %c0_94] : memref<10x10x128xbf16, #tpu.memory_space<vmem>>, vector<8x8x128xbf16>
    %83 = vector.shape_cast %82 : vector<8x8x128xbf16> to vector<64x128xbf16>
    %c0_95 = arith.constant 0 : index
    %c0_96 = arith.constant 0 : index
    %c0_97 = arith.constant 0 : index
    %84 = vector.load %arg4[%c0_95, %c0_96, %c0_97] : memref<9x128x128xbf16, #tpu.memory_space<vmem>>, vector<1x128x128xbf16>
    %85 = vector.shape_cast %84 : vector<1x128x128xbf16> to vector<128x128xbf16>
    %cst_98 = arith.constant dense<0.000000e+00> : vector<64x128xf32>
    %86 = tpu.matmul %83, %85, %cst_98 {dimension_numbers = #tpu.dot_dimension_numbers<[1], [0], [0], [1], [0, 0, 1, 1], [], []>} : vector<64x128xbf16>, vector<128x128xbf16>, vector<64x128xf32> -> vector<64x128xf32>
    %87 = arith.addf %81, %86 : vector<64x128xf32>
    %c0_99 = arith.constant 0 : index
    %c1_100 = arith.constant 1 : index
    %c0_101 = arith.constant 0 : index
    %88 = vector.load %arg9[%c0_99, %c1_100, %c0_101] : memref<10x10x128xbf16, #tpu.memory_space<vmem>>, vector<8x8x128xbf16>
    %89 = vector.shape_cast %88 : vector<8x8x128xbf16> to vector<64x128xbf16>
    %c1_102 = arith.constant 1 : index
    %c0_103 = arith.constant 0 : index
    %c0_104 = arith.constant 0 : index
    %90 = vector.load %arg4[%c1_102, %c0_103, %c0_104] : memref<9x128x128xbf16, #tpu.memory_space<vmem>>, vector<1x128x128xbf16>
    %91 = vector.shape_cast %90 : vector<1x128x128xbf16> to vector<128x128xbf16>
    %cst_105 = arith.constant dense<0.000000e+00> : vector<64x128xf32>
    %92 = tpu.matmul %89, %91, %cst_105 {dimension_numbers = #tpu.dot_dimension_numbers<[1], [0], [0], [1], [0, 0, 1, 1], [], []>} : vector<64x128xbf16>, vector<128x128xbf16>, vector<64x128xf32> -> vector<64x128xf32>
    %93 = arith.addf %87, %92 : vector<64x128xf32>
    %c0_106 = arith.constant 0 : index
    %c2_107 = arith.constant 2 : index
    %c0_108 = arith.constant 0 : index
    %94 = vector.load %arg9[%c0_106, %c2_107, %c0_108] : memref<10x10x128xbf16, #tpu.memory_space<vmem>>, vector<8x8x128xbf16>
    %95 = vector.shape_cast %94 : vector<8x8x128xbf16> to vector<64x128xbf16>
    %c2_109 = arith.constant 2 : index
    %c0_110 = arith.constant 0 : index
    %c0_111 = arith.constant 0 : index
    %96 = vector.load %arg4[%c2_109, %c0_110, %c0_111] : memref<9x128x128xbf16, #tpu.memory_space<vmem>>, vector<1x128x128xbf16>
    %97 = vector.shape_cast %96 : vector<1x128x128xbf16> to vector<128x128xbf16>
    %cst_112 = arith.constant dense<0.000000e+00> : vector<64x128xf32>
    %98 = tpu.matmul %95, %97, %cst_112 {dimension_numbers = #tpu.dot_dimension_numbers<[1], [0], [0], [1], [0, 0, 1, 1], [], []>} : vector<64x128xbf16>, vector<128x128xbf16>, vector<64x128xf32> -> vector<64x128xf32>
    %99 = arith.addf %93, %98 : vector<64x128xf32>
    %c1_113 = arith.constant 1 : index
    %c0_114 = arith.constant 0 : index
    %c0_115 = arith.constant 0 : index
    %100 = vector.load %arg9[%c1_113, %c0_114, %c0_115] : memref<10x10x128xbf16, #tpu.memory_space<vmem>>, vector<8x8x128xbf16>
    %101 = vector.shape_cast %100 : vector<8x8x128xbf16> to vector<64x128xbf16>
    %c3_116 = arith.constant 3 : index
    %c0_117 = arith.constant 0 : index
    %c0_118 = arith.constant 0 : index
    %102 = vector.load %arg4[%c3_116, %c0_117, %c0_118] : memref<9x128x128xbf16, #tpu.memory_space<vmem>>, vector<1x128x128xbf16>
    %103 = vector.shape_cast %102 : vector<1x128x128xbf16> to vector<128x128xbf16>
    %cst_119 = arith.constant dense<0.000000e+00> : vector<64x128xf32>
    %104 = tpu.matmul %101, %103, %cst_119 {dimension_numbers = #tpu.dot_dimension_numbers<[1], [0], [0], [1], [0, 0, 1, 1], [], []>} : vector<64x128xbf16>, vector<128x128xbf16>, vector<64x128xf32> -> vector<64x128xf32>
    %105 = arith.addf %99, %104 : vector<64x128xf32>
    %c1_120 = arith.constant 1 : index
    %c1_121 = arith.constant 1 : index
    %c0_122 = arith.constant 0 : index
    %106 = vector.load %arg9[%c1_120, %c1_121, %c0_122] : memref<10x10x128xbf16, #tpu.memory_space<vmem>>, vector<8x8x128xbf16>
    %107 = vector.shape_cast %106 : vector<8x8x128xbf16> to vector<64x128xbf16>
    %c4_123 = arith.constant 4 : index
    %c0_124 = arith.constant 0 : index
    %c0_125 = arith.constant 0 : index
    %108 = vector.load %arg4[%c4_123, %c0_124, %c0_125] : memref<9x128x128xbf16, #tpu.memory_space<vmem>>, vector<1x128x128xbf16>
    %109 = vector.shape_cast %108 : vector<1x128x128xbf16> to vector<128x128xbf16>
    %cst_126 = arith.constant dense<0.000000e+00> : vector<64x128xf32>
    %110 = tpu.matmul %107, %109, %cst_126 {dimension_numbers = #tpu.dot_dimension_numbers<[1], [0], [0], [1], [0, 0, 1, 1], [], []>} : vector<64x128xbf16>, vector<128x128xbf16>, vector<64x128xf32> -> vector<64x128xf32>
    %111 = arith.addf %105, %110 : vector<64x128xf32>
    %c1_127 = arith.constant 1 : index
    %c2_128 = arith.constant 2 : index
    %c0_129 = arith.constant 0 : index
    %112 = vector.load %arg9[%c1_127, %c2_128, %c0_129] : memref<10x10x128xbf16, #tpu.memory_space<vmem>>, vector<8x8x128xbf16>
    %113 = vector.shape_cast %112 : vector<8x8x128xbf16> to vector<64x128xbf16>
    %c5_130 = arith.constant 5 : index
    %c0_131 = arith.constant 0 : index
    %c0_132 = arith.constant 0 : index
    %114 = vector.load %arg4[%c5_130, %c0_131, %c0_132] : memref<9x128x128xbf16, #tpu.memory_space<vmem>>, vector<1x128x128xbf16>
    %115 = vector.shape_cast %114 : vector<1x128x128xbf16> to vector<128x128xbf16>
    %cst_133 = arith.constant dense<0.000000e+00> : vector<64x128xf32>
    %116 = tpu.matmul %113, %115, %cst_133 {dimension_numbers = #tpu.dot_dimension_numbers<[1], [0], [0], [1], [0, 0, 1, 1], [], []>} : vector<64x128xbf16>, vector<128x128xbf16>, vector<64x128xf32> -> vector<64x128xf32>
    %117 = arith.addf %111, %116 : vector<64x128xf32>
    %c2_134 = arith.constant 2 : index
    %c0_135 = arith.constant 0 : index
    %c0_136 = arith.constant 0 : index
    %118 = vector.load %arg9[%c2_134, %c0_135, %c0_136] : memref<10x10x128xbf16, #tpu.memory_space<vmem>>, vector<8x8x128xbf16>
    %119 = vector.shape_cast %118 : vector<8x8x128xbf16> to vector<64x128xbf16>
    %c6_137 = arith.constant 6 : index
    %c0_138 = arith.constant 0 : index
    %c0_139 = arith.constant 0 : index
    %120 = vector.load %arg4[%c6_137, %c0_138, %c0_139] : memref<9x128x128xbf16, #tpu.memory_space<vmem>>, vector<1x128x128xbf16>
    %121 = vector.shape_cast %120 : vector<1x128x128xbf16> to vector<128x128xbf16>
    %cst_140 = arith.constant dense<0.000000e+00> : vector<64x128xf32>
    %122 = tpu.matmul %119, %121, %cst_140 {dimension_numbers = #tpu.dot_dimension_numbers<[1], [0], [0], [1], [0, 0, 1, 1], [], []>} : vector<64x128xbf16>, vector<128x128xbf16>, vector<64x128xf32> -> vector<64x128xf32>
    %123 = arith.addf %117, %122 : vector<64x128xf32>
    %c2_141 = arith.constant 2 : index
    %c1_142 = arith.constant 1 : index
    %c0_143 = arith.constant 0 : index
    %124 = vector.load %arg9[%c2_141, %c1_142, %c0_143] : memref<10x10x128xbf16, #tpu.memory_space<vmem>>, vector<8x8x128xbf16>
    %125 = vector.shape_cast %124 : vector<8x8x128xbf16> to vector<64x128xbf16>
    %c7_144 = arith.constant 7 : index
    %c0_145 = arith.constant 0 : index
    %c0_146 = arith.constant 0 : index
    %126 = vector.load %arg4[%c7_144, %c0_145, %c0_146] : memref<9x128x128xbf16, #tpu.memory_space<vmem>>, vector<1x128x128xbf16>
    %127 = vector.shape_cast %126 : vector<1x128x128xbf16> to vector<128x128xbf16>
    %cst_147 = arith.constant dense<0.000000e+00> : vector<64x128xf32>
    %128 = tpu.matmul %125, %127, %cst_147 {dimension_numbers = #tpu.dot_dimension_numbers<[1], [0], [0], [1], [0, 0, 1, 1], [], []>} : vector<64x128xbf16>, vector<128x128xbf16>, vector<64x128xf32> -> vector<64x128xf32>
    %129 = arith.addf %123, %128 : vector<64x128xf32>
    %c2_148 = arith.constant 2 : index
    %c2_149 = arith.constant 2 : index
    %c0_150 = arith.constant 0 : index
    %130 = vector.load %arg9[%c2_148, %c2_149, %c0_150] : memref<10x10x128xbf16, #tpu.memory_space<vmem>>, vector<8x8x128xbf16>
    %131 = vector.shape_cast %130 : vector<8x8x128xbf16> to vector<64x128xbf16>
    %c8_151 = arith.constant 8 : index
    %c0_152 = arith.constant 0 : index
    %c0_153 = arith.constant 0 : index
    %132 = vector.load %arg4[%c8_151, %c0_152, %c0_153] : memref<9x128x128xbf16, #tpu.memory_space<vmem>>, vector<1x128x128xbf16>
    %133 = vector.shape_cast %132 : vector<1x128x128xbf16> to vector<128x128xbf16>
    %cst_154 = arith.constant dense<0.000000e+00> : vector<64x128xf32>
    %134 = tpu.matmul %131, %133, %cst_154 {dimension_numbers = #tpu.dot_dimension_numbers<[1], [0], [0], [1], [0, 0, 1, 1], [], []>} : vector<64x128xbf16>, vector<128x128xbf16>, vector<64x128xf32> -> vector<64x128xf32>
    %135 = arith.addf %129, %134 : vector<64x128xf32>
    %c0_155 = arith.constant 0 : index
    %c0_156 = arith.constant 0 : index
    %136 = vector.load %arg5[%c0_155, %c0_156] : memref<1x128xf32, #tpu.memory_space<vmem>>, vector<1x128xf32>
    %137 = vector.broadcast %136 : vector<1x128xf32> to vector<64x128xf32>
    %138 = arith.addf %135, %137 : vector<64x128xf32>
    %cst_157 = arith.constant 0.000000e+00 : f32
    %139 = vector.broadcast %cst_157 : f32 to vector<64x128xf32>
    %140 = arith.maximumf %138, %139 : vector<64x128xf32>
    %141 = vector.shape_cast %140 : vector<64x128xf32> to vector<8x8x128xf32>
    %c0_158 = arith.constant 0 : index
    %c0_159 = arith.constant 0 : index
    %c0_160 = arith.constant 0 : index
    %c0_161 = arith.constant 0 : index
    %142 = vector.load %arg8[%c0_158, %c0_159, %c0_160, %c0_161] : memref<1x8x8x128xf32, #tpu.memory_space<vmem>>, vector<1x8x8x128xf32>
    %143 = vector.shape_cast %142 : vector<1x8x8x128xf32> to vector<8x8x128xf32>
    %144 = vector.shape_cast %141 : vector<8x8x128xf32> to vector<1x8x8x128xf32>
    tpu.vector_store %arg8[%c0_158, %c0_159, %c0_160, %c0_161], %144 {strides = array<i32>} : memref<1x8x8x128xf32, #tpu.memory_space<vmem>>, vector<1x8x8x128xf32>,
    return
  }
  func.func @transform_0(%arg0: i32) -> (i32, i32, i32, i32, i32) {
    %c0_i32 = arith.constant 0 : i32
    %c0_i32_0 = arith.constant 0 : i32
    %c0_i32_1 = arith.constant 0 : i32
    %c0_i32_2 = arith.constant 0 : i32
    %c0_i32_3 = arith.constant 0 : i32
    return %arg0, %c0_i32, %c0_i32_0, %c0_i32_1, %c0_i32_2 : i32, i32, i32, i32, i32
  }
  func.func @transform_1(%arg0: i32) -> (i32, i32, i32) {
    %c0_i32 = arith.constant 0 : i32
    %c0_i32_0 = arith.constant 0 : i32
    %c0_i32_1 = arith.constant 0 : i32
    %c0_i32_2 = arith.constant 0 : i32
    return %c0_i32, %c0_i32_0, %c0_i32_1 : i32, i32, i32
  }
  func.func @transform_2(%arg0: i32) -> (i32, i32) {
    %c0_i32 = arith.constant 0 : i32
    %c0_i32_0 = arith.constant 0 : i32
    %c0_i32_1 = arith.constant 0 : i32
    return %c0_i32, %c0_i32_0 : i32, i32
  }
  func.func @transform_3(%arg0: i32) -> (i32, i32, i32) {
    %c0_i32 = arith.constant 0 : i32
    %c0_i32_0 = arith.constant 0 : i32
    %c0_i32_1 = arith.constant 0 : i32
    %c0_i32_2 = arith.constant 0 : i32
    return %c0_i32, %c0_i32_0, %c0_i32_1 : i32, i32, i32
  }
  func.func @transform_4(%arg0: i32) -> (i32, i32) {
    %c0_i32 = arith.constant 0 : i32
    %c0_i32_0 = arith.constant 0 : i32
    %c0_i32_1 = arith.constant 0 : i32
    return %c0_i32, %c0_i32_0 : i32, i32
  }
  func.func @transform_5(%arg0: i32) -> (i32, i32) {
    %c0_i32 = arith.constant 0 : i32
    %c0_i32_0 = arith.constant 0 : i32
    %c0_i32_1 = arith.constant 0 : i32
    return %c0_i32, %c0_i32_0 : i32, i32
  }
  func.func @transform_6(%arg0: i32) -> (i32, i32) {
    %c0_i32 = arith.constant 0 : i32
    %c0_i32_0 = arith.constant 0 : i32
    %c0_i32_1 = arith.constant 0 : i32
    return %c0_i32, %c0_i32_0 : i32, i32
  }
  func.func @transform_7(%arg0: i32) -> (i32, i32, i32, i32) {
    %c0_i32 = arith.constant 0 : i32
    %c0_i32_0 = arith.constant 0 : i32
    %c0_i32_1 = arith.constant 0 : i32
    %c0_i32_2 = arith.constant 0 : i32
    return %arg0, %c0_i32, %c0_i32_0, %c0_i32_1 : i32, i32, i32, i32
  }
}

</mosaic_0001>

<bundles_post_ra>
// kernel: tpu_custom_call.1
= control target key start
LH: loop header
LB: loop body
LE: loop exit
PB: predicated region body
PF: predicated region fallthrough
CT: control target
= control target key end

     0   :  { %12 = vsyncpa [#allocation4], 0  ;;  %s6326_s0 = inlined_call_operand.vmem [shape: bf16[2,4,9,9,4], index: 0, kind: input, shape index: {}]   ;;  %s6327_s1 = inlined_call_operand.vmem [shape: bf16[9,4,128], index: 1, kind: input, shape index: {}]   ;;  %s6328_s2 = inlined_call_operand.vmem [shape: f32[1,128], index: 2, kind: input, shape index: {}]   ;;  %s6329_s3 = inlined_call_operand.vmem [shape: bf16[9,128,128], index: 3, kind: input, shape index: {}]   ;;  %s6330_s4 = inlined_call_operand.vmem [shape: f32[1,128], index: 4, kind: input, shape index: {}]   ;;  %s6331_s5 = inlined_call_operand.vmem [shape: bf16[4,128], index: 5, kind: input, shape index: {}]   ;;  %s6332_s6 = inlined_call_operand.vmem [shape: f32[1,128], index: 6, kind: input, shape index: {}]   ;;  %s6333_s7 = inlined_call_operand.hbm [shape: f32[2,8,8,128], index: 7, kind: output, shape index: {}]  }
   0x1   :  { %14 = vsyncpa [#allocation4 + $0x1], 0  ;;  %s5295_s24 = smov 0   ;;  %s5297_s25 = smov 0  }
   0x2   :  { %s5299_s26 = smov 0   ;;  %s5301_s27 = smov 0  }
   0x3 LB: > { %s5316_s28 = sadd.s32 4294967295, %s5249_s27   ;;  %s4091_s29 = sadd.s32 4294967294, %s5249_s27   ;;  %s5249_s27 = sphi %s5301_s27, %s6371_s27   ;;  %s5245_s26 = sphi %s5299_s26, %s6370_s26   ;;  %s5241_s25 = sphi %s5297_s25, %s6369_s25   ;;  %s5237_s24 = sphi %s5295_s24, %s6368_s24  }
   0x4   : > { %s5320_s30 = sadd.s32 1, %s5249_s27   ;;  %s179_s8 = sadd.s32 1, %s5245_s26 }
   0x5   : > { %s176_s9 = ssub.s32 %s5249_s27, %s5320_s30  ;;  %p189_p0 = scmp.ne.s32.totalorder %s5245_s26, %s5241_s25 }
   0x6   : > { %p177_p1 = scmp.eq.s32.totalorder %s176_s9, 0  ;;  %p190_p2 = scmp.eq.s32.totalorder %s5316_s28, 1 }
   0x7   : > { %p195_p3 = scmp.ne.s32.totalorder %s5241_s25, %s5237_s24  ;;  %p196_p4 = scmp.eq.s32.totalorder %s4091_s29, 1 }
   0x8   : > { %s5331_s10 = scalar_select %p177_p1, %s5245_s26, %s179_s8  }
   0x9   : > { %p5333_p5 = por %p190_p2, %p189_p0  ;;  %p5337_p6 = por %p196_p4, %p195_p3 }
   0xa   : > { %p4094_p7 = scmp.ge.s32.totalorder %s5249_s27, 1  ;;  %p240_p8 = scmp.lt.s32.totalorder %s5249_s27, 3 }
   0xc   : > { %p241_p9 = pnand %p4094_p7, %p240_p8 }
   0xe   : > { %244 = sbr.rel (%p241_p9) target bundleno = 674 (0x2a2), region = 48 }
  0x13   : > { %v4105_v0 = vld [vmem:[%s6327_s1 + $0x2] sm:$0x3]  ;;  %vm351_vm0 = vcmask 1041408   ;;  %p272_p10 = scmp.lt.s32.totalorder %s5316_s28, 1  ;;  %v306_v2 = vld [vmem:[%s6327_s1] sm:$0x3] }
  0x14   : > { %5024 = vmatprep.subr.msk.bf16.mxu1 %vm351_vm0, %v4105_v0  ;;  %v353_v1 = vsel %vm351_vm0, %v4105_v0, 0  ;;  %v4122_v3 = vld [vmem:[%s6327_s1 + $0x4] sm:$0x3]  ;;  %v4156_v5 = vld [vmem:[%s6327_s1 + $0x8] sm:$0x3]  ;;  %vm338_vm1 = vcmask 31744  }
  0x15   : > { %4709 = vmatpush3.bf16.msra.mxu1 %v353_v1  ;;  %s273_s19 = scalar_select %p272_p10, %s5316_s28, 1  ;;  %5026 = vmatprep.subr.msk.bf16.mxu0 %vm351_vm0, %v4122_v3  ;;  %v678_v4 = vsel %vm351_vm0, %v4122_v3, 0  ;;  %v453_v6 = vsel %vm351_vm0, %v306_v2, 0  ;;  %vm536_vm2 = vsmask.f32 3328  ;;  %v5381_v12 = vsel %vm351_vm0, %v4156_v5, 0 }
  0x16   : > { %5025 = vmatprep.subr.msk.bf16.mxu1 %vm351_vm0, %v306_v2  ;;  %4729 = vmatpush3.bf16.msra.mxu0 %v678_v4  ;;  %vm537_vm3 = vsmask.f32 7440  ;;  %v4139_v7 = vld [vmem:[%s6327_s1 + $0x6] sm:$0x3]  ;;  %vm1825_vm5 = vcmask 1043456   ;;  %vm1831_vm7 = vcmask 1040384  }
  0x17   : > { %s5034_s22 = smul.u32 288, %s273_s19  ;;  %5028 = vmatprep.subr.msk.bf16.mxu0 %vm351_vm0, %v4156_v5  ;;  %v5378_v11 = vsel %vm351_vm0, %v4139_v7, 0  ;;  %vm5396_vm4 = vmor %vm536_vm2, %vm537_vm3  ;;  %vm1826_vm6 = vsmask.f32 7938  ;;  %vm1832_vm8 = vsmask.f32 256 }
  0x18   : > { %vm5684_vm9 = vmand %vm1825_vm5, %vm1826_vm6  ;;  %vm2470_vm11 = vcmask 1042432   ;;  %vm2471_vm12 = vcmask 1046532   ;;  %v5188_v40 = vld [vmem:[%s6329_s3 + $0x200] sm:$0xff]   ;;  %s4549_s9 = sshll.u32 %s5316_s28, 10  ;;  %s5252_s18 = smov [#allocation3]  }
  0x19   : > { %s5367_s8 = scalar_lea.vmem %s6326_s0, %s5034_s22  ;;  %vm5690_vm10 = vmand %vm1831_vm7, %vm1832_vm8  ;;  %s6278_s16 = scalar_lea.hbm %s6333_s7, %s4549_s9 }
  0x1a   : > { %v5077_v8 = vld [vmem:[%s5367_s8 + $0x48] ss:$8 sps:$4 sm:$0xff]   ;;  %v5078_v9 = vld [vmem:[%s5367_s8 + $0x58] ss:$8 sps:$4 sm:$0xff]   ;;  %v521_v14 = vld [vmem:[%s5367_s8 + $0x4] sm:$0x1] }
  0x1b   : > { %4710 = vmatprep.mubr.msk.bf16.mxu1 %vm338_vm1, %v5077_v8  ;;  %v5079_v10 = vld [vmem:[%s5367_s8 + $0x68] ss:$8 sps:$4 sm:$0xff]   ;;  %v520_v13 = vld [vmem:[%s5367_s8] sm:$0xf]  ;;  %v523_v17 = vld [vmem:[%s5367_s8 + $0xc] sm:$0x1] }
  0x1c   : > { %4711 = vmatmul.mubr.msk.bf16.vlgmr.msra.gmra.mxu1 %vm338_vm1, %v5078_v9  ;;  %v522_v15 = vld [vmem:[%s5367_s8 + $0x8] sm:$0xf]  ;;  %v5080_v16 = vld [vmem:[%s5367_s8 + $0x78] ss:$8 sps:$4 sm:$0xff]   ;;  %v540_v18 = vshrl.u32 %v520_v13, 16  ;;  %v543_v19 = vshll.u32 %v520_v13, 16  ;;  %vm5772_vm13 = vmor %vm2470_vm11, %vm2471_vm12 }
  0x1d   : > { %4719 = vmatpush3.bf16.msra.mxu1 %v453_v6  ;;  %4714 = vmatprep.mubr.msk.bf16.mxu1 %vm338_vm1, %v5079_v10  ;;  %v549_v20 = vshll.u32 %v521_v14, 16  ;;  %v554_v21 = vshrl.u32 %v522_v15, 16  ;;  %v557_v22 = vshll.u32 %v522_v15, 16  ;;  %v563_v23 = vshll.u32 %v523_v17, 16  ;;  %v524_v24 = vld [vmem:[%s5367_s8 + $0x10] sm:$0xf] }
  0x1e   : > { %5027 = vmatprep.subr.msk.bf16.mxu1 %vm351_vm0, %v4139_v7  ;;  %v525_v25 = vld [vmem:[%s5367_s8 + $0x14] sm:$0x1]  ;;  %v542_v26 = vrot.slane %v540_v18, 4  ;;  %v545_v27 = vrot.slane %v543_v19, 5  ;;  %v526_v30 = vld [vmem:[%s5367_s8 + $0x18] sm:$0xf] }
  0x1f   : > { %v551_v28 = vrot.slane %v549_v20, 5  ;;  %v556_v29 = vrot.slane %v554_v21, 4  ;;  %v559_v31 = vrot.slane %v557_v22, 5  ;;  %v565_v32 = vrot.slane %v563_v23, 5  ;;  %v527_v33 = vld [vmem:[%s5367_s8 + $0x1c] sm:$0x1] }
  0x20   : > { %v568_v34 = vshrl.u32 %v524_v24, 16  ;;  %v571_v35 = vshll.u32 %v524_v24, 16  ;;  %v546_v36 = vor.u32 %v545_v27, %v542_v26  ;;  %v577_v37 = vshll.u32 %v525_v25, 16  ;;  %v5081_v49 = vld [vmem:[%s5367_s8] ss:$8 sps:$4 sm:$0xff]   ;;  %s5193_s19 = sshll.u32 %s5252_s18, 4  ;;  %s5194_s19 = int_to_ptr.vmem [resolvable:$false] %s5193_s19 }
  0x21   : > { %v582_v38 = vshrl.u32 %v526_v30, 16  ;;  %v585_v39 = vshll.u32 %v526_v30, 16  ;;  %v560_v41 = vor.u32 %v559_v31, %v556_v29  ;;  %v591_v44 = vshll.u32 %v527_v33, 16  ;;  %v5082_v55 = vld [vmem:[%s5367_s8 + $0x10] ss:$8 sps:$4 sm:$0xff]   ;;  %s5195_s20 = scalar_lea.vmem %s5194_s19, 2048 }
  0x22   : > { %v570_v42 = vrot.slane %v568_v34, 4  ;;  %v573_v43 = vrot.slane %v571_v35, 5  ;;  %v547_v45 = vrot.slane %v546_v36, 4  ;;  %v579_v46 = vrot.slane %v577_v37, 5  ;;  %v528_v56 = vld [vmem:[%s5367_s8 + $0x20] sm:$0xf] }
  0x23   : > { %v584_v47 = vrot.slane %v582_v38, 4  ;;  %v587_v48 = vrot.slane %v585_v39, 5  ;;  %v561_v50 = vrot.slane %v560_v41, 4  ;;  %v593_v52 = vrot.slane %v591_v44, 5  ;;  %v529_v57 = vld [vmem:[%s5367_s8 + $0x24] sm:$0x1] }
  0x24   : > { %4715 = vmatmul.mubr.msk.bf16.gmra.mxu1 %vm338_vm1, %v5080_v16  ;;  %v574_v51 = vor.u32 %v573_v43, %v570_v42  ;;  %v552_v53 = vsel %vm5396_vm4, %v547_v45, %v551_v28  ;;  %v530_v60 = vld [vmem:[%s5367_s8 + $0x28] sm:$0xf]  ;;  %v531_v61 = vld [vmem:[%s5367_s8 + $0x2c] sm:$0x1]  ;;  %v596_v62 = vshrl.u32 %v528_v56, 16  ;;  %v599_v1 = vshll.u32 %v528_v56, 16 }
  0x25   : > { %v588_v54 = vor.u32 %v587_v48, %v584_v47  ;;  %4720 = vmatprep.mubr.msk.bf16.mxu1 %vm338_vm1, %v5081_v49  ;;  %v566_v58 = vsel %vm5396_vm4, %v561_v50, %v565_v32  ;;  %v605_v2 = vshll.u32 %v529_v57, 16  ;;  %v532_v3 = vld [vmem:[%s5367_s8 + $0x30] sm:$0xf]  ;;  %v610_v6 = vshrl.u32 %v530_v60, 16  ;;  %v533_v8 = vld [vmem:[%s5367_s8 + $0x34] sm:$0x1] }
  0x26   : > { %v575_v59 = vrot.slane %v574_v51, 4  ;;  %v4123_v63 = vcombine.low %v552_v53, %v566_v58  ;;  %v598_v5 = vrot.slane %v596_v62, 4  ;;  %v613_v7 = vshll.u32 %v530_v60, 16  ;;  %v4181_v9 = vld [vmem:[%s6327_s1 + $0xa] sm:$0x3] }
  0x27   : > { %v589_v0 = vrot.slane %v588_v54, 4  ;;  %v601_v13 = vrot.slane %v599_v1, 5  ;;  %v607_v14 = vrot.slane %v605_v2, 5  ;;  %v619_v15 = vshll.u32 %v531_v61, 16  ;;  %v534_v16 = vld [vmem:[%s5367_s8 + $0x38] sm:$0xf] }
  0x28   : > { %v580_v4 = vsel %vm5396_vm4, %v575_v59, %v579_v46  ;;  %4730 = vmatprep.mubr.msk.bf16.mxu0 %vm338_vm1, %v4123_v63  ;;  %v4198_v17 = vld [vmem:[%s6327_s1 + $0xc] sm:$0x3]  ;;  %v612_v19 = vrot.slane %v610_v6, 4  ;;  %v615_v20 = vrot.slane %v613_v7, 5  ;;  %v535_v21 = vld [vmem:[%s5367_s8 + $0x3c] sm:$0x1] }
  0x29   : > { %v594_v10 = vsel %vm5396_vm4, %v589_v0, %v593_v52  ;;  %v624_v22 = vshrl.u32 %v532_v3, 16  ;;  %v602_v23 = vor.u32 %v601_v13, %v598_v5  ;;  %v621_v24 = vrot.slane %v619_v15, 5  ;;  %v5083_v34 = vld [vmem:[%s5367_s8 + $0x20] ss:$8 sps:$4 sm:$0xff]   ;;  %v4215_v47 = vld [vmem:[%s6327_s1 + $0xe] sm:$0x3] }
  0x2a   : > { %v4124_v18 = vcombine.low %v580_v4, %v594_v10  ;;  %v627_v25 = vshll.u32 %v532_v3, 16  ;;  %v633_v26 = vshll.u32 %v533_v8, 16  ;;  %v616_v27 = vor.u32 %v615_v20, %v612_v19  ;;  %v5087_v49 = vld [vmem:[%s5367_s8 + $0x90] ss:$8 sps:$4 sm:$0xff]   ;;  %v5088_v56 = vld [vmem:[%s5367_s8 + $0xa0] ss:$8 sps:$4 sm:$0xff]  }
  0x2b   : > { %v626_v28 = vrot.slane %v624_v22, 4  ;;  %v638_v29 = vshrl.u32 %v534_v16, 16  ;;  %v641_v30 = vshll.u32 %v534_v16, 16  ;;  %v603_v31 = vrot.slane %v602_v23, 4  ;;  %v5085_v51 = vld [vmem:[%s5367_s8 + $0xd8] ss:$8 sps:$4 sm:$0xff]  }
  0x2c   : > { %4721 = vmatmul.mubr.msk.bf16.vlgmr.msra.gmra.mxu1 %vm338_vm1, %v5082_v55  ;;  %4731 = vmatmul.mubr.msk.bf16.vlgmr.msra.gmra.mxu0 %vm338_vm1, %v4124_v18  ;;  %v629_v32 = vrot.slane %v627_v25, 5  ;;  %v647_v33 = vshll.u32 %v535_v21, 16  ;;  %v617_v35 = vrot.slane %v616_v27, 4  ;;  %v635_v39 = vrot.slane %v633_v26, 5  ;;  %v5091_v57 = vld [vmem:[%s5367_s8 + $0xb0] ss:$8 sps:$4 sm:$0xff]  }
  0x2d   : > { %4739 = vmatpush3.bf16.msra.mxu1 %v5378_v11  ;;  %4749 = vmatpush3.bf16.msra.mxu0 %v5381_v12  ;;  %v640_v36 = vrot.slane %v638_v29, 4  ;;  %v643_v37 = vrot.slane %v641_v30, 5  ;;  %v608_v11 = vsel %vm5396_vm4, %v603_v31, %v607_v14  ;;  %v5084_v12 = vld [vmem:[%s5367_s8 + $0x30] ss:$8 sps:$4 sm:$0xff]   ;;  %v1146_v53 = vsel %vm351_vm0, %v4181_v9, 0 }
  0x2e   : > { %5029 = vmatprep.subr.msk.bf16.mxu1 %vm351_vm0, %v4181_v9  ;;  %5030 = vmatprep.subr.msk.bf16.mxu0 %vm351_vm0, %v4198_v17  ;;  %v630_v38 = vor.u32 %v629_v32, %v626_v28  ;;  %v622_v41 = vsel %vm5396_vm4, %v617_v35, %v621_v24  ;;  %v649_v43 = vrot.slane %v647_v33, 5  ;;  %v1265_v54 = vsel %vm351_vm0, %v4198_v17, 0  ;;  %v5086_v58 = vld [vmem:[%s5367_s8 + $0xe8] ss:$8 sps:$4 sm:$0xff]   ;;  %v5089_v59 = vld [vmem:[%s5367_s8 + $0xf8] ss:$8 sps:$4 sm:$0xff]  }
  0x2f   : > { %4724 = vmatprep.mubr.msk.bf16.mxu1 %vm338_vm1, %v5083_v34  ;;  %v644_v42 = vor.u32 %v643_v37, %v640_v36  ;;  %v4125_v44 = vcombine.low %v608_v11, %v622_v41  ;;  %v5455_v55 = vsel %vm351_vm0, %v4215_v47, 0  ;;  %v4165_v60 = vld [vmem:[%s5367_s8 + $0x90] sm:$0xf]  ;;  %v4166_v61 = vld [vmem:[%s5367_s8 + $0x94] sm:$0x1] }
  0x30   : > { %v631_v45 = vrot.slane %v630_v38, 4  ;;  %v4167_v62 = vld [vmem:[%s5367_s8 + $0x98] sm:$0xf]  ;;  %v4168_v63 = vld [vmem:[%s5367_s8 + $0x9c] sm:$0x1]  ;;  %v1008_v0 = vshrl.u32 %v4165_v60, 16 }
  0x31   : > { %v645_v46 = vrot.slane %v644_v42, 4  ;;  %4734 = vmatprep.mubr.msk.bf16.mxu0 %vm338_vm1, %v4125_v44  ;;  %v1011_v1 = vshll.u32 %v4165_v60, 16  ;;  %v1017_v2 = vshll.u32 %v4166_v61, 16  ;;  %v1022_v3 = vshrl.u32 %v4167_v62, 16  ;;  %v4169_v4 = vld [vmem:[%s5367_s8 + $0xa0] sm:$0xf] }
  0x32   : > { %v636_v48 = vsel %vm5396_vm4, %v631_v45, %v635_v39  ;;  %v4240_v5 = vld [vmem:[%s6327_s1 + $0x10] sm:$0x3]  ;;  %v5092_v6 = vld [vmem:[%s5367_s8 + $0xc0] ss:$8 sps:$4 sm:$0xff]   ;;  %v1025_v7 = vshll.u32 %v4167_v62, 16  ;;  %v1031_v8 = vshll.u32 %v4168_v63, 16 }
  0x33   : > { %v650_v50 = vsel %vm5396_vm4, %v645_v46, %v649_v43  ;;  %v4170_v9 = vld [vmem:[%s5367_s8 + $0xa4] sm:$0x1]  ;;  %v4171_v10 = vld [vmem:[%s5367_s8 + $0xa8] sm:$0xf]  ;;  %v1010_v13 = vrot.slane %v1008_v0, 4  ;;  %v1013_v14 = vrot.slane %v1011_v1, 5 }
  0x34   : > { %4725 = vmatmul.mubr.msk.bf16.gmra.mxu1 %vm338_vm1, %v5084_v12  ;;  %v4126_v52 = vcombine.low %v636_v48, %v650_v50  ;;  %v1019_v15 = vrot.slane %v1017_v2, 5  ;;  %v1024_v16 = vrot.slane %v1022_v3, 4  ;;  %v4172_v17 = vld [vmem:[%s5367_s8 + $0xac] sm:$0x1]  ;;  %v1027_v18 = vrot.slane %v1025_v7, 5 }
  0x35   : > { %4740 = vmatprep.mubr.msk.bf16.mxu1 %vm338_vm1, %v5087_v49  ;;  %v1033_v19 = vrot.slane %v1031_v8, 5  ;;  %v1036_v20 = vshrl.u32 %v4169_v4, 16  ;;  %v1039_v21 = vshll.u32 %v4169_v4, 16  ;;  %v1014_v22 = vor.u32 %v1013_v14, %v1010_v13  ;;  %v5090_v26 = vld [vmem:[%s5367_s8 + $0x108] ss:$8 sps:$4 sm:$0xff]  }
  0x36   : > { %4735 = vmatmul.mubr.msk.bf16.gmra.mxu0 %vm338_vm1, %v4126_v52  ;;  %v1045_v23 = vshll.u32 %v4170_v9, 16  ;;  %v1050_v24 = vshrl.u32 %v4171_v10, 16  ;;  %v1053_v25 = vshll.u32 %v4171_v10, 16  ;;  %v1028_v27 = vor.u32 %v1027_v18, %v1024_v16  ;;  %v5093_v31 = vld [vmem:[%s5367_s8 + $0x8] ss:$8 sps:$4 sm:$0xff]  }
  0x37   : > { %4750 = vmatprep.mubr.msk.bf16.mxu0 %vm338_vm1, %v5085_v51  ;;  %v1038_v28 = vrot.slane %v1036_v20, 4  ;;  %v1041_v29 = vrot.slane %v1039_v21, 5  ;;  %v1059_v30 = vshll.u32 %v4172_v17, 16  ;;  %v1015_v32 = vrot.slane %v1014_v22, 4  ;;  %v4173_v41 = vld [vmem:[%s5367_s8 + $0xb0] sm:$0xf] }
  0x38   : > { %v1052_v33 = vrot.slane %v1050_v24, 4  ;;  %v1055_v34 = vrot.slane %v1053_v25, 5  ;;  %v5484_v35 = vsel %vm351_vm0, %v4240_v5, 0  ;;  %v1029_v36 = vrot.slane %v1028_v27, 4  ;;  %v4174_v42 = vld [vmem:[%s5367_s8 + $0xb4] sm:$0x1] }
  0x39   : > { %v1042_v37 = vor.u32 %v1041_v29, %v1038_v28  ;;  %v1047_v11 = vrot.slane %v1045_v23, 5  ;;  %v1061_v38 = vrot.slane %v1059_v30, 5  ;;  %v1020_v39 = vsel %vm5396_vm4, %v1015_v32, %v1019_v15  ;;  %v4175_v43 = vld [vmem:[%s5367_s8 + $0xb8] sm:$0xf]  ;;  %v4176_v46 = vld [vmem:[%s5367_s8 + $0xbc] sm:$0x1] }
  0x3a   : > { %v1056_v12 = vor.u32 %v1055_v34, %v1052_v33  ;;  %v1034_v44 = vsel %vm5396_vm4, %v1029_v36, %v1033_v19  ;;  %v1067_v48 = vshll.u32 %v4173_v41, 16  ;;  %v1073_v51 = vshll.u32 %v4174_v42, 16  ;;  %v4179_v0 = vld [vmem:[%s5367_s8 + $0xc8] sm:$0xf]  ;;  %v5094_v1 = vld [vmem:[%s5367_s8 + $0x18] ss:$8 sps:$4 sm:$0xff]  }
  0x3b   : > { %v1043_v45 = vrot.slane %v1042_v37, 4  ;;  %v4182_v49 = vcombine.low %v1020_v39, %v1034_v44  ;;  %v1078_v52 = vshrl.u32 %v4175_v43, 16  ;;  %v1087_v63 = vshll.u32 %v4176_v46, 16  ;;  %v5095_v7 = vld [vmem:[%s5367_s8 + $0x28] ss:$8 sps:$4 sm:$0xff]  }
  0x3c   : > { %4741 = vmatmul.mubr.msk.bf16.vlgmr.msra.gmra.mxu1 %vm338_vm1, %v5088_v56  ;;  %v1057_v50 = vrot.slane %v1056_v12, 4  ;;  %v1075_v61 = vrot.slane %v1073_v51, 5  ;;  %v1106_v13 = vshrl.u32 %v4179_v0, 16  ;;  %v4224_v14 = vld [vmem:[%s5367_s8 + $0x8] sm:$0xf]  ;;  %v1109_v18 = vshll.u32 %v4179_v0, 16 }
  0x3d   : > { %4759 = vmatpush3.bf16.msra.mxu1 %v1146_v53  ;;  %4744 = vmatprep.mubr.msk.bf16.mxu1 %vm338_vm1, %v5091_v57  ;;  %v4177_v53 = vld [vmem:[%s5367_s8 + $0xc0] sm:$0xf]  ;;  %v1069_v57 = vrot.slane %v1067_v48, 5  ;;  %v1080_v62 = vrot.slane %v1078_v52, 4  ;;  %v1089_v8 = vrot.slane %v1087_v63, 5  ;;  %v1476_v28 = vshrl.u32 %v4224_v14, 16 }
  0x3e   : > { %5031 = vmatprep.subr.msk.bf16.mxu1 %vm351_vm0, %v4215_v47  ;;  %4751 = vmatmul.mubr.msk.bf16.vlgmr.msra.gmra.mxu0 %vm338_vm1, %v5086_v58  ;;  %v1064_v47 = vshrl.u32 %v4173_v41, 16  ;;  %v1081_v58 = vshll.u32 %v4175_v43, 16  ;;  %v1062_v60 = vsel %vm5396_vm4, %v1057_v50, %v1061_v38  ;;  %v1095_v9 = vshll.u32 %v4177_v53, 16  ;;  %v4225_v19 = vld [vmem:[%s5367_s8 + $0xc] sm:$0x1] }
  0x3f   : > { %4769 = vmatpush3.bf16.msra.mxu0 %v1265_v54  ;;  %4754 = vmatprep.mubr.msk.bf16.mxu0 %vm338_vm1, %v5089_v59  ;;  %v1048_v54 = vsel %vm5396_vm4, %v1043_v45, %v1047_v11  ;;  %v4178_v59 = vld [vmem:[%s5367_s8 + $0xc4] sm:$0x1]  ;;  %v1108_v22 = vrot.slane %v1106_v13, 4  ;;  %v4226_v24 = vld [vmem:[%s5367_s8 + $0x10] sm:$0xf]  ;;  %v1111_v27 = vrot.slane %v1109_v18, 5 }
  0x40   : > { %5032 = vmatprep.subr.msk.bf16.mxu0 %vm351_vm0, %v4240_v5  ;;  %v1066_v56 = vrot.slane %v1064_v47, 4  ;;  %v4183_v2 = vcombine.low %v1048_v54, %v1062_v60  ;;  %v1083_v4 = vrot.slane %v1081_v58, 5  ;;  %v4180_v5 = vld [vmem:[%s5367_s8 + $0xcc] sm:$0x1]  ;;  %v1101_v10 = vshll.u32 %v4178_v59, 16 }
  0x41   : > { %v1097_v20 = vrot.slane %v1095_v9, 5  ;;  %v1115_v23 = vshll.u32 %v4180_v5, 16  ;;  %v1479_v32 = vshll.u32 %v4224_v14, 16  ;;  %v1112_v34 = vor.u32 %v1111_v27, %v1108_v22  ;;  %v4228_v11 = vld [vmem:[%s5367_s8 + $0x18] sm:$0xf] }
  0x42   : > { %v1070_v3 = vor.u32 %v1069_v57, %v1066_v56  ;;  %v1084_v16 = vor.u32 %v1083_v4, %v1080_v62  ;;  %v1103_v21 = vrot.slane %v1101_v10, 5  ;;  %v1478_v36 = vrot.slane %v1476_v28, 4  ;;  %v4229_v38 = vld [vmem:[%s5367_s8 + $0x1c] sm:$0x1]  ;;  %v4230_v43 = vld [vmem:[%s5367_s8 + $0x20] sm:$0xf] }
  0x43   : > { %v1117_v30 = vrot.slane %v1115_v23, 5  ;;  %v1490_v37 = vshrl.u32 %v4226_v24, 16  ;;  %v1481_v41 = vrot.slane %v1479_v32, 5  ;;  %v5096_v44 = vld [vmem:[%s5367_s8 + $0x38] ss:$8 sps:$4 sm:$0xff]   ;;  %v1113_v45 = vrot.slane %v1112_v34, 4 }
  0x44   : > { %4745 = vmatmul.mubr.msk.bf16.gmra.mxu1 %vm338_vm1, %v5092_v6  ;;  %v1092_v6 = vshrl.u32 %v4177_v53, 16  ;;  %v1071_v15 = vrot.slane %v1070_v3, 4  ;;  %v1493_v47 = vshll.u32 %v4226_v24, 16  ;;  %v1504_v51 = vshrl.u32 %v4228_v11, 16  ;;  %v5097_v57 = vld [vmem:[%s5367_s8 + $0x50] ss:$8 sps:$4 sm:$0xff]  }
  0x45   : > { %4760 = vmatprep.mubr.msk.bf16.mxu1 %vm338_vm1, %v4182_v49  ;;  %v1492_v46 = vrot.slane %v1490_v37, 4  ;;  %v1482_v50 = vor.u32 %v1481_v41, %v1478_v36  ;;  %v1507_v52 = vshll.u32 %v4228_v11, 16  ;;  %v1118_v53 = vsel %vm5396_vm4, %v1113_v45, %v1117_v30  ;;  %v5098_v13 = vld [vmem:[%s5367_s8 + $0x60] ss:$8 sps:$4 sm:$0xff]   ;;  %v4233_v18 = vld [vmem:[%s5367_s8 + $0x2c] sm:$0x1] }
  0x46   : > { %4755 = vmatmul.mubr.msk.bf16.gmra.mxu0 %vm338_vm1, %v5090_v26  ;;  %v1094_v17 = vrot.slane %v1092_v6, 4  ;;  %v1076_v25 = vsel %vm5396_vm4, %v1071_v15, %v1075_v61  ;;  %v1085_v26 = vrot.slane %v1084_v16, 4  ;;  %v1495_v54 = vrot.slane %v1493_v47, 5  ;;  %v5099_v16 = vld [vmem:[%s5367_s8 + $0x70] ss:$8 sps:$4 sm:$0xff]  }
  0x47   : > { %4770 = vmatprep.mubr.msk.bf16.mxu0 %vm338_vm1, %v5093_v31  ;;  %v4227_v31 = vld [vmem:[%s5367_s8 + $0x14] sm:$0x1]  ;;  %v1513_v56 = vshll.u32 %v4229_v38, 16  ;;  %v1483_v59 = vrot.slane %v1482_v50, 4  ;;  %v1506_v60 = vrot.slane %v1504_v51, 4  ;;  %v1509_v61 = vrot.slane %v1507_v52, 5 }
  0x48   : > { %v1098_v29 = vor.u32 %v1097_v20, %v1094_v17  ;;  %v1090_v33 = vsel %vm5396_vm4, %v1085_v26, %v1089_v8  ;;  %v1499_v48 = vshll.u32 %v4227_v31, 16  ;;  %v1496_v62 = vor.u32 %v1495_v54, %v1492_v46  ;;  %v4232_v17 = vld [vmem:[%s5367_s8 + $0x28] sm:$0xf]  ;;  %v4235_v22 = vld [vmem:[%s5367_s8 + $0x34] sm:$0x1] }
  0x49   : > { %v4184_v39 = vcombine.low %v1076_v25, %v1090_v33  ;;  %v1518_v0 = vshrl.u32 %v4230_v43, 16  ;;  %v1515_v3 = vrot.slane %v1513_v56, 5  ;;  %v1532_v23 = vshrl.u32 %v4232_v17, 16  ;;  %v4236_v25 = vld [vmem:[%s5367_s8 + $0x38] sm:$0xf] }
  0x4a   : > { %v1099_v12 = vrot.slane %v1098_v29, 4  ;;  %v1501_v63 = vrot.slane %v1499_v48, 5  ;;  %v1497_v6 = vrot.slane %v1496_v62, 4  ;;  %v1535_v24 = vshll.u32 %v4232_v17, 16  ;;  %v4237_v30 = vld [vmem:[%s5367_s8 + $0x3c] sm:$0x1] }
  0x4b   : > { %v1541_v27 = vshll.u32 %v4233_v18, 16  ;;  %v1534_v31 = vrot.slane %v1532_v23, 4  ;;  %v4238_v33 = vld [vmem:[%s5367_s8 + $0x40] sm:$0xf]  ;;  %v1560_v34 = vshrl.u32 %v4236_v25, 16  ;;  %v1563_v45 = vshll.u32 %v4236_v25, 16 }
  0x4c   : > { %4761 = vmatmul.mubr.msk.bf16.vlgmr.msra.gmra.mxu1 %vm338_vm1, %v4183_v2  ;;  %v1104_v49 = vsel %vm5396_vm4, %v1099_v12, %v1103_v21  ;;  %v1510_v2 = vor.u32 %v1509_v61, %v1506_v60  ;;  %v1502_v14 = vsel %vm5396_vm4, %v1497_v6, %v1501_v63  ;;  %v1537_v32 = vrot.slane %v1535_v24, 5  ;;  %v5100_v48 = vld [vmem:[%s5367_s8 + $0x80] ss:$8 sps:$4 sm:$0xff]   ;;  %v5102_v6 = vld [vmem:[%s6329_s3 + $0x30] sm:$0xff]   ;;  %v5109_v17 = vld [vmem:[%s6329_s3 + $0x18] sm:$0xff]  }
  0x4d   : > { %4779 = vmatpush3.bf16.msra.mxu1 %v5455_v55  ;;  %v1485_v55 = vshll.u32 %v4225_v19, 16  ;;  %4764 = vmatprep.mubr.msk.bf16.mxu1 %vm338_vm1, %v4184_v39  ;;  %v4185_v58 = vcombine.low %v1104_v49, %v1118_v53  ;;  %v4234_v19 = vld [vmem:[%s5367_s8 + $0x30] sm:$0xf]  ;;  %v1543_v37 = vrot.slane %v1541_v27, 5  ;;  %v4239_v39 = vld [vmem:[%s5367_s8 + $0x44] sm:$0x1] }
  0x4e   : > { %4771 = vmatmul.mubr.msk.bf16.vlgmr.msra.gmra.mxu0 %vm338_vm1, %v5094_v1  ;;  %v1521_v1 = vshll.u32 %v4230_v43, 16  ;;  %v1511_v9 = vrot.slane %v1510_v2, 4  ;;  %v1546_v28 = vshrl.u32 %v4234_v19, 16  ;;  %v1549_v29 = vshll.u32 %v4234_v19, 16  ;;  %v5110_v18 = vld [vmem:[%s6329_s3 + $0x68] sm:$0xff]   ;;  %v5111_v19 = vld [vmem:[%s6329_s3 + $0x10] sm:$0xff]  }
  0x4f   : > { %4789 = vmatpush3.bf16.msra.mxu0 %v5484_v35  ;;  %4774 = vmatprep.mubr.msk.bf16.mxu0 %vm338_vm1, %v5095_v7  ;;  %v1487_v42 = vrot.slane %v1485_v55, 5  ;;  %v4231_v35 = vld [vmem:[%s5367_s8 + $0x24] sm:$0x1]  ;;  %v1520_v7 = vrot.slane %v1518_v0, 4  ;;  %v1555_v55 = vshll.u32 %v4235_v22, 16  ;;  %v1538_v41 = vor.u32 %v1537_v32, %v1534_v31  ;;  %v5114_v22 = vld [vmem:[%s6329_s3 + $0x58] sm:$0xff]  }
  0x50   : > { %v1527_v4 = vshll.u32 %v4231_v35, 16  ;;  %v1523_v8 = vrot.slane %v1521_v1, 5  ;;  %v1516_v21 = vsel %vm5396_vm4, %v1511_v9, %v1515_v3  ;;  %v1548_v11 = vrot.slane %v1546_v28, 4  ;;  %v5103_v9 = vld [vmem:[%s6329_s3 + $0x28] sm:$0xff]   ;;  %v5115_v23 = vld [vmem:[%s6329_s3] sm:$0xff]   ;;  %v5117_v24 = vld [vmem:[%s6329_s3 + $0x50] sm:$0xff]  }
  0x51   : > { %v1488_v5 = vsel %vm5396_vm4, %v1483_v59, %v1487_v42  ;;  %v1551_v38 = vrot.slane %v1549_v29, 5  ;;  %v1557_v42 = vrot.slane %v1555_v55, 5  ;;  %v1562_v43 = vrot.slane %v1560_v34, 4  ;;  %v5623_v25 = vld [vmem:[%s6329_s3 + $0xb8] sm:$0xff]   ;;  %v5121_v27 = vld [vmem:[%s6329_s3 + $0x48] sm:$0xff]   ;;  %v5125_v29 = vld [vmem:[%s6329_s3 + $0x40] sm:$0xff]  }
  0x52   : > { %v1529_v10 = vrot.slane %v1527_v4, 5  ;;  %v1524_v15 = vor.u32 %v1523_v8, %v1520_v7  ;;  %v4241_v20 = vcombine.low %v1488_v5, %v1502_v14  ;;  %v1569_v46 = vshll.u32 %v4237_v30, 16  ;;  %v5101_v4 = vld [vmem:[%s6329_s3 + $0x38] sm:$0xff]   ;;  %v1887_v7 = vld [vmem:[%s6331_s5] sm:$0x3] }
  0x53   : > { %v1574_v47 = vshrl.u32 %v4238_v33, 16  ;;  %v1539_v49 = vrot.slane %v1538_v41, 4  ;;  %v1577_v50 = vshll.u32 %v4238_v33, 16  ;;  %v1583_v35 = vshll.u32 %v4239_v39, 16  ;;  %4808 = vmatprep.subr.bf16.mxu0 %v5101_v4  ;;  %5033 = vmatprep.subr.msk.bf16.mxu1 %vm351_vm0, %v1887_v7  ;;  %v5106_v14 = vld [vmem:[%s5367_s8 + $0xe8] ss:$8 sps:$4 sm:$0xff]  }
  0x54   : > { %4765 = vmatmul.mubr.msk.bf16.gmra.mxu1 %vm338_vm1, %v4185_v58  ;;  %v1525_v26 = vrot.slane %v1524_v15, 4  ;;  %v1565_v52 = vrot.slane %v1563_v45, 5  ;;  %v1571_v53 = vrot.slane %v1569_v46, 5  ;;  %v5251_v5 = vmov 0   ;;  %v5107_v15 = vld [vmem:[%s6329_s3 + $0x20] sm:$0xff]   ;;  %v5639_v30 = vld [vmem:[%s6329_s3 + $0xf8] sm:$0xff]  }
  0x55   : > { %4780 = vmatprep.mubr.msk.bf16.mxu1 %vm338_vm1, %v5097_v57  ;;  %v1576_v54 = vrot.slane %v1574_v47, 4  ;;  %v1544_v56 = vsel %vm5396_vm4, %v1539_v49, %v1543_v37  ;;  %v1579_v57 = vrot.slane %v1577_v50, 5  ;;  %v1585_v58 = vrot.slane %v1583_v35, 5  ;;  %284 = vst [vmem:[#allocation2 + $0x18] sm:$0xf] %v5251_v5 }
  0x56   : > { %4775 = vmatmul.mubr.msk.bf16.gmra.mxu0 %vm338_vm1, %v5096_v44  ;;  %v1530_v36 = vsel %vm5396_vm4, %v1525_v26, %v1529_v10  ;;  %v1552_v44 = vor.u32 %v1551_v38, %v1548_v11  ;;  %v1566_v60 = vor.u32 %v1565_v52, %v1562_v43  ;;  %285 = vst [vmem:[#allocation2 + $0x1c] sm:$0x1] %v5251_v5  ;;  %278 = vst [vmem:[#allocation2] sm:$0xf] %v5251_v5  ;;  %v5104_v10 = vld [vmem:[%s5367_s8 + $0xd8] ss:$8 sps:$4 sm:$0xff]  }
  0x57   : > { %4790 = vmatprep.mubr.msk.bf16.mxu0 %vm338_vm1, %v4241_v20  ;;  %v4242_v12 = vcombine.low %v1516_v21, %v1530_v36  ;;  %v1580_v62 = vor.u32 %v1579_v57, %v1576_v54  ;;  %279 = vst [vmem:[#allocation2 + $0x4] sm:$0x1] %v5251_v5  ;;  %280 = vst [vmem:[#allocation2 + $0x8] sm:$0xf] %v5251_v5  ;;  %v1928_v8 = vsel %vm351_vm0, %v1887_v7, 0  ;;  %v5112_v20 = vld [vmem:[%s6329_s3 + $0x60] sm:$0xff]  }
  0x58   : > { %v1553_v51 = vrot.slane %v1552_v44, 4  ;;  %v1567_v63 = vrot.slane %v1566_v60, 4  ;;  %281 = vst [vmem:[#allocation2 + $0xc] sm:$0x1] %v5251_v5  ;;  %282 = vst [vmem:[#allocation2 + $0x10] sm:$0xf] %v5251_v5 }
  0x59   : > { %v1581_v0 = vrot.slane %v1580_v62, 4  ;;  %283 = vst [vmem:[#allocation2 + $0x14] sm:$0x1] %v5251_v5  ;;  %286 = vst [vmem:[#allocation2 + $0x20] sm:$0xf] %v5251_v5  ;;  %v5113_v21 = vld [vmem:[%s6329_s3 + $0x8] sm:$0xff]  }
  0x5a   : > { %v1558_v59 = vsel %vm5396_vm4, %v1553_v51, %v1557_v42  ;;  %v1572_v1 = vsel %vm5396_vm4, %v1567_v63, %v1571_v53  ;;  %287 = vst [vmem:[#allocation2 + $0x24] sm:$0x1] %v5251_v5  ;;  %288 = vst [vmem:[#allocation2 + $0x28] sm:$0xf] %v5251_v5  ;;  %v5119_v26 = vld [vmem:[%s5367_s8 + $0xf8] ss:$8 sps:$4 sm:$0xff]  }
  0x5b   : > { %v4243_v61 = vcombine.low %v1544_v56, %v1558_v59  ;;  %v1586_v2 = vsel %vm5396_vm4, %v1581_v0, %v1585_v58  ;;  %289 = vst [vmem:[#allocation2 + $0x2c] sm:$0x1] %v5251_v5  ;;  %290 = vst [vmem:[#allocation2 + $0x30] sm:$0xf] %v5251_v5  ;;  %v5122_v28 = vld [vmem:[%s5367_s8 + $0x108] ss:$8 sps:$4 sm:$0xff]  }
  0x5c   : > { %4781 = vmatmul.mubr.msk.bf16.vlgmr.msra.gmra.mxu1 %vm338_vm1, %v5098_v13  ;;  %v4244_v3 = vcombine.low %v1572_v1, %v1586_v2  ;;  %291 = vst [vmem:[#allocation2 + $0x34] sm:$0x1] %v5251_v5  ;;  %292 = vst [vmem:[#allocation2 + $0x38] sm:$0xf] %v5251_v5  ;;  %v5105_v13 = vld [vmem:[%s6329_s3 + $0x78] sm:$0xff]   ;;  %s269_s8 = sand.u32 1, %s5241_s25  }
  0x5d   : > { %4784 = vmatprep.mubr.msk.bf16.mxu1 %vm338_vm1, %v5099_v16  ;;  %293 = vst [vmem:[#allocation2 + $0x3c] sm:$0x1] %v5251_v5  ;;  %294 = vst [vmem:[#allocation2 + $0x40] sm:$0xf] %v5251_v5  ;;  %4799 = vmatpush3.bf16.msra.mxu1 %v1928_v8  ;;  %v5108_v16 = vld [vmem:[%s6329_s3 + $0x70] sm:$0xff]   ;;  %s4095_s23 = sshll.u32 %s269_s8, 6 }
  0x5e   : > { %4791 = vmatmul.mubr.msk.bf16.vlgmr.msra.gmra.mxu0 %vm338_vm1, %v4242_v12  ;;  %295 = vst [vmem:[#allocation2 + $0x44] sm:$0x1] %v5251_v5  ;;  %296 = vst [vmem:[#allocation2 + $0x48] sm:$0xf] %v5251_v5  ;;  %4832 = vmatprep.subr.bf16.mxu1 %v5105_v13  ;;  %s6257_s29 = scalar_lea.vmem [#allocation3], %s4095_s23  ;;  %s6286_s28 = scalar_lea.sflag [#allocation4], %s269_s8 }
  0x5f   : > { %4794 = vmatprep.mubr.msk.bf16.mxu0 %vm338_vm1, %v4243_v61  ;;  %297 = vst [vmem:[#allocation2 + $0x4c] sm:$0x1] %v5251_v5  ;;  %4809 = vmatpush3.bf16.msra.mxu0 %v5101_v4  ;;  %s4029_s13 = sshll.u32 %s6257_s29, 4  ;;  %s6280_s13 = int_to_ptr.vmem [resolvable:$true] %s4029_s13 }
  0x60   : > { %4810 = vmatprep.subr.bf16.mxu0 %v5102_v6  ;;  %s5189_s17 = scalar_lea.vmem %s6280_s13, 1024  ;;  %p5196_p0 = scmp.lt.s32.totalorder %s6280_s13, %s5194_s19 }
  0x61   : > { %p5190_p11 = scmp.ne.s32.totalorder %s6280_s13, %s5189_s17  ;;  %p5197_p1 = scmp.lt.s32.totalorder %s5195_s20, %s5189_s17 }
  0x63   : > { %4811 = vmatpush3.bf16.msra.mxu0 %v5102_v6  ;;  %p5191_p12 = pnand %p5190_p11, %p5333_p5  ;;  %p5198_p2 = por %p5197_p1, %p5196_p0 }
  0x64   : > { %4785 = vmatmul.mubr.msk.bf16.gmra.mxu1 %vm338_vm1, %v5100_v48  ;;  %4812 = vmatprep.subr.bf16.mxu0 %v5103_v9 }
  0x65   : > { %4800 = vmatprep.mubr.msk.bf16.mxu1 %vm338_vm1, %v5104_v10  ;;  %p5192_p13 = pneg %p5191_p12 }
  0x66   : > { %4795 = vmatmul.mubr.msk.bf16.gmra.mxu0 %vm338_vm1, %v4244_v3 }
  0x67   : > { %4813 = vmatpush3.bf16.msra.mxu0 %v5103_v9  ;;  %p5199_p3 = pnand %p5198_p2, %p5192_p13 }
  0x68   : > { %4814 = vmatprep.subr.bf16.mxu0 %v5107_v15 }
  0x6b   : > { %4815 = vmatpush3.bf16.msra.mxu0 %v5107_v15 }
  0x6c   : > { %4801 = vmatmul.mubr.msk.bf16.vlgmr.msra.gmra.mxu1 %vm338_vm1, %v5106_v14  ;;  %4816 = vmatprep.subr.bf16.mxu0 %v5109_v17 }
  0x6d   : > { %4833 = vmatpush3.bf16.msra.mxu1 %v5105_v13  ;;  %4804 = vmatprep.mubr.msk.bf16.mxu1 %vm338_vm1, %v5119_v26 }
  0x6e   : > { %4834 = vmatprep.subr.bf16.mxu1 %v5108_v16 }
  0x6f   : > { %4817 = vmatpush3.bf16.msra.mxu0 %v5109_v17 }
  0x70   : > { %4818 = vmatprep.subr.bf16.mxu0 %v5111_v19 }
  0x71   : > { %4835 = vmatpush3.bf16.msra.mxu1 %v5108_v16 }
  0x72   : > { %4836 = vmatprep.subr.bf16.mxu1 %v5110_v18 }
  0x73   : > { %4819 = vmatpush3.bf16.msra.mxu0 %v5111_v19 }
  0x74   : > { %4820 = vmatprep.subr.bf16.mxu0 %v5113_v21  ;;  %4805 = vmatmul.mubr.msk.bf16.gmra.mxu1 %vm338_vm1, %v5122_v28 }
  0x75   : > { %4837 = vmatpush3.bf16.msra.mxu1 %v5110_v18 }
  0x76   : > { %4838 = vmatprep.subr.bf16.mxu1 %v5112_v20 }
  0x77   : > { %4821 = vmatpush3.bf16.msra.mxu0 %v5113_v21 }
  0x78   : > { %4822 = vmatprep.subr.bf16.mxu0 %v5115_v23 }
  0x79   : > { %4839 = vmatpush3.bf16.msra.mxu1 %v5112_v20 }
  0x7a   : > { %4840 = vmatprep.subr.bf16.mxu1 %v5114_v22 }
  0x7b   : > { %4823 = vmatpush3.bf16.msra.mxu0 %v5115_v23 }
  0x7c   : > { %4856 = vmatprep.subr.bf16.mxu0 %v5623_v25 }
  0x7d   : > { %4841 = vmatpush3.bf16.msra.mxu1 %v5114_v22 }
  0x7e   : > { %4842 = vmatprep.subr.bf16.mxu1 %v5117_v24 }
  0x81   : > { %4843 = vmatpush3.bf16.msra.mxu1 %v5117_v24 }
  0x82   : > { %4844 = vmatprep.subr.bf16.mxu1 %v5121_v27 }
  0x85   : > { %4845 = vmatpush3.bf16.msra.mxu1 %v5121_v27 }
  0x86   : > { %4846 = vmatprep.subr.bf16.mxu1 %v5125_v29 }
  0x89   : > { %4847 = vmatpush3.bf16.msra.mxu1 %v5125_v29 }
  0x8a   : > { %4880 = vmatprep.subr.bf16.mxu1 %v5639_v30 }
  0xdc   : > { %v4712_v31 = vpop.f32.mrf.mxu1 }
  0xde   : > { %v389_v32 = vpop.f32.mrf.mxu1 }
  0xe0   : > { %v4713_v55 = vpop.f32.mrf.mxu1 }
  0xe2   : > { %v392_v33 = vpop.f32.mrf.mxu1 }
  0xe4   : > { %v4716_v34 = vpop.f32.mrf.mxu1 }
  0xe6   : > { %v405_v36 = vpop.f32.mrf.mxu1 }
  0xe8   : > { %v5642_v37 = vpop.f32.mrf.mxu1 }
  0xea   : > { %v5644_v11 = vpop.f32.mrf.mxu1 }
  0xec   : > { %v4722_v38 = vpop.f32.mrf.mxu1  ;;  %v4732_v39 = vpop.f32.mrf.mxu0 }
  0xed   : > { %v498_v6 = vadd.f32 %v4722_v38, %v4712_v31 }
  0xee   : > { %v489_v12 = vpop.f32.mrf.mxu1  ;;  %v714_v41 = vpop.f32.mrf.mxu0 }
  0xef   : > { %v490_v9 = vadd.f32 %v489_v12, %v389_v32  ;;  %v747_v15 = vadd.f32 %v4732_v39, %v498_v6 }
  0xf0   : > { %v4723_v42 = vpop.f32.mrf.mxu1  ;;  %v4733_v43 = vpop.f32.mrf.mxu0 }
  0xf1   : > { %v501_v14 = vadd.f32 %v4723_v42, %v4713_v55  ;;  %v745_v20 = vadd.f32 %v714_v41, %v490_v9 }
  0xf2   : > { %v492_v44 = vpop.f32.mrf.mxu1  ;;  %v717_v45 = vpop.f32.mrf.mxu0 }
  0xf3   : > { %v493_v18 = vadd.f32 %v492_v44, %v392_v33  ;;  %v748_v23 = vadd.f32 %v4733_v43, %v501_v14 }
  0xf4   : > { %v4726_v46 = vpop.f32.mrf.mxu1 }
  0xf5   : > { %v514_v26 = vadd.f32 %v4726_v46, %v4716_v34  ;;  %v746_v29 = vadd.f32 %v717_v45, %v493_v18 }
  0xf6   : > { %v505_v47 = vpop.f32.mrf.mxu1  ;;  %v4736_v48 = vpop.f32.mrf.mxu0 }
  0xf7   : > { %v506_v32 = vadd.f32 %v505_v47, %v405_v36  ;;  %v751_v43 = vadd.f32 %v4736_v48, %v514_v26 }
  0xf8   : > { %v4727_v49 = vpop.f32.mrf.mxu1  ;;  %v730_v50 = vpop.f32.mrf.mxu0 }
  0xf9   : > { %v517_v33 = vadd.f32 %v4727_v49, %v5642_v37 }
  0xfa   : > { %v508_v35 = vpop.f32.mrf.mxu1  ;;  %v4737_v51 = vpop.f32.mrf.mxu0 }
  0xfb   : > { %v509_v41 = vadd.f32 %v508_v35, %v5644_v11  ;;  %v2164_v35 = vld [vmem:[#allocation2] sm:$0xf] }
  0xfc   : > { %v4742_v52 = vpop.f32.mrf.mxu1  ;;  %v733_v53 = vpop.f32.mrf.mxu0 }
  0xfd   : > { %v866_v19 = vadd.f32 %v4742_v52, %v747_v15  ;;  %v750_v9 = vadd.f32 %v733_v53, %v509_v41 }
  0xfe   : > { %v833_v54 = vpop.f32.mrf.mxu1  ;;  %v4752_v56 = vpop.f32.mrf.mxu0 }
  0xff   : > { %v864_v22 = vadd.f32 %v833_v54, %v745_v20  ;;  %v985_v31 = vadd.f32 %v4752_v56, %v866_v19  ;;  %v749_v54 = vadd.f32 %v730_v50, %v506_v32  ;;  %v5665_v50 = vld [vmem:[%s6328_s2] ss:$0 sm:$0xff] }
 0x100   : > { %v4743_v57 = vpop.f32.mrf.mxu1  ;;  %v952_v58 = vpop.f32.mrf.mxu0 }
 0x101   : > { %v867_v28 = vadd.f32 %v4743_v57, %v748_v23  ;;  %v983_v42 = vadd.f32 %v952_v58, %v864_v22 }
 0x102   : > { %v836_v59 = vpop.f32.mrf.mxu1  ;;  %v4753_v60 = vpop.f32.mrf.mxu0 }
 0x103   : > { %v865_v55 = vadd.f32 %v836_v59, %v746_v29  ;;  %v986_v46 = vadd.f32 %v4753_v60, %v867_v28 }
 0x104   : > { %v4746_v61 = vpop.f32.mrf.mxu1  ;;  %v955_v62 = vpop.f32.mrf.mxu0 }
 0x105   : > { %v870_v45 = vadd.f32 %v4746_v61, %v751_v43  ;;  %v984_v47 = vadd.f32 %v955_v62, %v865_v55 }
 0x106   : > { %v849_v63 = vpop.f32.mrf.mxu1  ;;  %v4756_v0 = vpop.f32.mrf.mxu0 }
 0x107   : > { %v868_v59 = vadd.f32 %v849_v63, %v749_v54  ;;  %v989_v14 = vadd.f32 %v4756_v0, %v870_v45 }
 0x108   : > { %v4747_v1 = vpop.f32.mrf.mxu1  ;;  %v5646_v2 = vpop.f32.mrf.mxu0 }
 0x10a   : > { %v852_v3 = vpop.f32.mrf.mxu1  ;;  %v5648_v4 = vpop.f32.mrf.mxu0 }
 0x10b   : > { %v869_v60 = vadd.f32 %v852_v3, %v750_v9 }
 0x10c   : > { %v4762_v5 = vpop.f32.mrf.mxu1  ;;  %v5650_v7 = vpop.f32.mrf.mxu0 }
 0x10d   : > { %v1215_v39 = vadd.f32 %v4762_v5, %v985_v31  ;;  %v752_v5 = vadd.f32 %v4737_v51, %v517_v33  ;;  %v988_v22 = vadd.f32 %v5650_v7, %v869_v60 }
 0x10e   : > { %v1182_v8 = vpop.f32.mrf.mxu1  ;;  %v4772_v10 = vpop.f32.mrf.mxu0 }
 0x10f   : > { %v1213_v34 = vadd.f32 %v1182_v8, %v983_v42  ;;  %v1334_v58 = vadd.f32 %v4772_v10, %v1215_v39  ;;  %v871_v8 = vadd.f32 %v4747_v1, %v752_v5  ;;  %v987_v10 = vadd.f32 %v5646_v2, %v868_v59 }
 0x110   : > { %v4763_v13 = vpop.f32.mrf.mxu1  ;;  %v1301_v16 = vpop.f32.mrf.mxu0  ;;  %v2181_v1 = vshrl.u32 %v2164_v35, 16 }
 0x111   : > { %v1216_v36 = vadd.f32 %v4763_v13, %v986_v46  ;;  %v1332_v48 = vadd.f32 %v1301_v16, %v1213_v34  ;;  %v990_v20 = vadd.f32 %v5648_v4, %v871_v8 }
 0x112   : > { %v1185_v17 = vpop.f32.mrf.mxu1  ;;  %v4773_v21 = vpop.f32.mrf.mxu0  ;;  %v5675_v34 = vrot.slane %v2181_v1, 4 }
 0x113   : > { %v1214_v49 = vadd.f32 %v1185_v17, %v984_v47  ;;  %v1335_v51 = vadd.f32 %v4773_v21, %v1216_v36  ;;  %v2184_v21 = vshll.u32 %v2164_v35, 16 }
 0x114   : > { %v1304_v24 = vpop.f32.mrf.mxu0  ;;  %v4766_v27 = vpop.f32.mrf.mxu1 }
 0x115   : > { %v1219_v53 = vadd.f32 %v4766_v27, %v989_v14  ;;  %v1333_v18 = vadd.f32 %v1304_v24, %v1214_v49  ;;  %v5677_v54 = vrot.slane %v2184_v21, 5 }
 0x116   : > { %v5652_v38 = vpop.f32.mrf.mxu0  ;;  %v1198_v12 = vpop.f32.mrf.mxu1 }
 0x117   : > { %v1217_v19 = vadd.f32 %v1198_v12, %v987_v10  ;;  %v1338_v39 = vadd.f32 %v5652_v38, %v1219_v53  ;;  %v1834_v53 = vld [vmem:[#allocation2 + $0xc] sm:$0x1] }
 0x118   : > { %v5654_v6 = vpop.f32.mrf.mxu0  ;;  %v4767_v44 = vpop.f32.mrf.mxu1 }
 0x119   : > { %v1220_v31 = vadd.f32 %v4767_v44, %v990_v20  ;;  %v1336_v41 = vadd.f32 %v5654_v6, %v1217_v19 }
 0x11a   : > { %v5658_v52 = vpop.f32.mrf.mxu0  ;;  %v1201_v56 = vpop.f32.mrf.mxu1 }
 0x11b   : > { %v1218_v32 = vadd.f32 %v1201_v56, %v988_v22  ;;  %v1339_v36 = vadd.f32 %v5658_v52, %v1220_v31  ;;  %v1843_v52 = vld [vmem:[#allocation2 + $0x18] sm:$0xf] }
 0x11c   : > { %v5660_v57 = vpop.f32.mrf.mxu0  ;;  %v4782_v37 = vpop.f32.mrf.mxu1 }
 0x11d   : > { %v1453_v11 = vadd.f32 %v4782_v37, %v1334_v58  ;;  %v1337_v58 = vadd.f32 %v5660_v57, %v1218_v32 }
 0x11e   : > { %v4792_v15 = vpop.f32.mrf.mxu0  ;;  %v1420_v61 = vpop.f32.mrf.mxu1 }
 0x11f   : > { %v1683_v62 = vadd.f32 %v4792_v15, %v1453_v11  ;;  %v1451_v63 = vadd.f32 %v1420_v61, %v1332_v48  ;;  %v1846_v48 = vld [vmem:[#allocation2 + $0x1c] sm:$0x1] }
 0x120   : > { %v1650_v13 = vpop.f32.mrf.mxu0  ;;  %v4783_v16 = vpop.f32.mrf.mxu1 }
 0x121   : > { %v1698_v0 = vadd.f32 %v5665_v50, %v1683_v62  ;;  %v1681_v3 = vadd.f32 %v1650_v13, %v1451_v63  ;;  %v1454_v17 = vadd.f32 %v4783_v16, %v1335_v51  ;;  %v1828_v51 = vld [vmem:[#allocation2 + $0x8] sm:$0xf] }
 0x122   : > { %v4793_v23 = vpop.f32.mrf.mxu0  ;;  %v1423_v26 = vpop.f32.mrf.mxu1 }
 0x123   : > { %v1706_v27 = vmax.f32 %v1698_v0, 0.0  ;;  %v1696_v2 = vadd.f32 %v5665_v50, %v1681_v3  ;;  %v1684_v28 = vadd.f32 %v4793_v23, %v1454_v17  ;;  %v1452_v29 = vadd.f32 %v1423_v26, %v1333_v18 }
 0x124   : > { %v1653_v55 = vpop.f32.mrf.mxu0  ;;  %v4786_v24 = vpop.f32.mrf.mxu1 }
 0x125   : > { %v4543_v12 = vpack.c.bf16 %v1706_v27, %v1706_v27  ;;  %v1704_v42 = vmax.f32 %v1696_v2, 0.0  ;;  %v1699_v4 = vadd.f32 %v5665_v50, %v1684_v28  ;;  %v1682_v7 = vadd.f32 %v1653_v55, %v1452_v29  ;;  %v1849_v28 = vld [vmem:[#allocation2 + $0x20] sm:$0xf]  ;;  %v1852_v29 = vld [vmem:[#allocation2 + $0x24] sm:$0x1] }
 0x126   : > { %v1457_v33 = vadd.f32 %v4786_v24, %v1338_v39  ;;  %v1436_v43 = vpop.f32.mrf.mxu1  ;;  %v4796_v49 = vpop.f32.mrf.mxu0 }
 0x127   : > { %v1761_v46 = vshrl.u32 %v4543_v12, 16  ;;  %v4541_v44 = vpack.c.bf16 %v1704_v42, %v1704_v42  ;;  %v1707_v45 = vmax.f32 %v1699_v4, 0.0  ;;  %v1697_v38 = vadd.f32 %v5665_v50, %v1682_v7  ;;  %v1837_v42 = vld [vmem:[#allocation2 + $0x10] sm:$0xf]  ;;  %v5704_v7 = vld [vmem:[#allocation2 + $0x4] sm:$0x1] }
 0x128   : > { %v1455_v56 = vadd.f32 %v1436_v43, %v1336_v41  ;;  %v4787_v47 = vpop.f32.mrf.mxu1  ;;  %v1764_v5 = vshll.u32 %v4543_v12, 16  ;;  %v1687_v8 = vadd.f32 %v4796_v49, %v1457_v33  ;;  %v1666_v63 = vpop.f32.mrf.mxu0  ;;  %v1840_v33 = vld [vmem:[#allocation2 + $0x14] sm:$0x1] }
 0x129   : > { %v1763_v59 = vrot.slane %v1761_v46, 7  ;;  %v1745_v9 = vshrl.u32 %v4541_v44, 16  ;;  %v4544_v37 = vpack.c.bf16 %v1707_v45, %v1707_v45  ;;  %v1748_v57 = vshll.u32 %v4541_v44, 16  ;;  %v5707_v45 = vld [vmem:[#allocation2] sm:$0xe] }
 0x12a   : > { %v1705_v35 = vmax.f32 %v1697_v38, 0.0  ;;  %v1458_v60 = vadd.f32 %v4787_v47, %v1339_v36  ;;  %v1702_v16 = vadd.f32 %v5665_v50, %v1687_v8  ;;  %v1685_v1 = vadd.f32 %v1666_v63, %v1455_v56  ;;  %v1439_v0 = vpop.f32.mrf.mxu1  ;;  %v4797_v20 = vpop.f32.mrf.mxu0 }
 0x12b   : > { %v1766_v14 = vor.u32 %v1764_v5, %v1763_v59  ;;  %v1767_v15 = vrot.slane %v1763_v59, 4  ;;  %v1747_v61 = vrot.slane %v1745_v9, 7  ;;  %v1769_v62 = vshrl.u32 %v4544_v37, 16 }
 0x12c   : > { %v1772_v10 = vshll.u32 %v4544_v37, 16  ;;  %v4542_v13 = vpack.c.bf16 %v1705_v35, %v1705_v35  ;;  %v1710_v21 = vmax.f32 %v1702_v16, 0.0  ;;  %v1700_v31 = vadd.f32 %v5665_v50, %v1685_v1  ;;  %v1669_v55 = vpop.f32.mrf.mxu0 }
 0x12d   : > { %v1844_v3 = vsel %vm5684_vm9, %v1766_v14, %v1843_v52  ;;  %v1847_v17 = vsel %vm5690_vm10, %v1767_v15, %v1846_v48  ;;  %v1750_v18 = vor.u32 %v1748_v57, %v1747_v61  ;;  %v1751_v19 = vrot.slane %v1747_v61, 4  ;;  %v1867_v52 = vld [vmem:[#allocation2 + $0x38] sm:$0xf]  ;;  %v1870_v48 = vld [vmem:[#allocation2 + $0x3c] sm:$0x1] }
 0x12e   : > { %1845 = vst [vmem:[#allocation2 + $0x18] sm:$0xf] %v1844_v3  ;;  %1848 = vst [vmem:[#allocation2 + $0x1c] sm:$0x1] %v1847_v17  ;;  %v1771_v22 = vrot.slane %v1769_v62, 7  ;;  %v1753_v23 = vshrl.u32 %v4542_v13, 16  ;;  %v1456_v32 = vadd.f32 %v1439_v0, %v1337_v58  ;;  %v4547_v4 = vpack.c.bf16 %v1710_v21, %v1710_v21 }
 0x12f   : > { %v1756_v26 = vshll.u32 %v4542_v13, 16  ;;  %v1829_v27 = vsel %vm5684_vm9, %v1750_v18, %v1828_v51  ;;  %v1835_v2 = vsel %vm5690_vm10, %v1751_v19, %v1834_v53  ;;  %v1708_v41 = vmax.f32 %v1700_v31, 0.0 }
 0x130   : > { %1830 = vst [vmem:[#allocation2 + $0x8] sm:$0xf] %v1829_v27  ;;  %1836 = vst [vmem:[#allocation2 + $0xc] sm:$0x1] %v1835_v2  ;;  %v1774_v39 = vor.u32 %v1772_v10, %v1771_v22  ;;  %v1775_v24 = vrot.slane %v1771_v22, 4  ;;  %v1755_v12 = vrot.slane %v1753_v23, 7  ;;  %v1688_v43 = vadd.f32 %v4797_v20, %v1458_v60 }
 0x131   : > { %v1686_v46 = vadd.f32 %v1669_v55, %v1456_v32  ;;  %v2190_v44 = vshll.u32 %v5704_v7, 16  ;;  %v1793_v58 = vshrl.u32 %v4547_v4, 16  ;;  %v4545_v59 = vpack.c.bf16 %v1708_v41, %v1708_v41  ;;  %v1873_v55 = vld [vmem:[#allocation2 + $0x40] sm:$0xf] }
 0x132   : > { %v1850_v38 = vsel %vm5684_vm9, %v1774_v39, %v1849_v28  ;;  %v1853_v56 = vsel %vm5690_vm10, %v1775_v24, %v1852_v29  ;;  %v1758_v36 = vor.u32 %v1756_v26, %v1755_v12  ;;  %v1759_v47 = vrot.slane %v1755_v12, 4  ;;  %v1876_v39 = vld [vmem:[#allocation2 + $0x44] sm:$0x1]  ;;  %v1861_v24 = vld [vmem:[#allocation2 + $0x30] sm:$0xf] }
 0x133   : > { %1851 = vst [vmem:[#allocation2 + $0x20] sm:$0xf] %v1850_v38  ;;  %1854 = vst [vmem:[#allocation2 + $0x24] sm:$0x1] %v1853_v56  ;;  %v1703_v5 = vadd.f32 %v5665_v50, %v1688_v43  ;;  %v2187_v9 = vor.u32 %v5677_v54, %v5675_v34  ;;  %v1701_v57 = vadd.f32 %v5665_v50, %v1686_v46  ;;  %v4315_v35 = vrot.slane %v5707_v45, 9 }
 0x134   : > { %v1838_v37 = vsel %vm5684_vm9, %v1758_v36, %v1837_v42  ;;  %v1841_v49 = vsel %vm5690_vm10, %v1759_v47, %v1840_v33  ;;  %v1795_v8 = vrot.slane %v1793_v58, 7  ;;  %v1796_v60 = vshll.u32 %v4547_v4, 16  ;;  %v1855_v34 = vld [vmem:[#allocation2 + $0x28] sm:$0xf]  ;;  %v1858_v54 = vld [vmem:[#allocation2 + $0x2c] sm:$0x1] }
 0x135   : > { %1839 = vst [vmem:[#allocation2 + $0x10] sm:$0xf] %v1838_v37  ;;  %1842 = vst [vmem:[#allocation2 + $0x14] sm:$0x1] %v1841_v49  ;;  %v1777_v14 = vshrl.u32 %v4545_v59, 16  ;;  %v1711_v15 = vmax.f32 %v1703_v5, 0.0 }
 0x136   : > { %v1780_v61 = vshll.u32 %v4545_v59, 16  ;;  %v1709_v62 = vmax.f32 %v1701_v57, 0.0  ;;  %v5722_v63 = vrot.slane %v2190_v44, 5  ;;  %v5724_v51 = vld [vmem:[#allocation2 + $0x18] sm:$0xf]  ;;  %v2475_v53 = vrot.slane %v5704_v7, 5 }
 0x137   : > { %v1798_v10 = vor.u32 %v1796_v60, %v1795_v8  ;;  %v1799_v50 = vrot.slane %v1795_v8, 4  ;;  %v1779_v13 = vrot.slane %v1777_v14, 7  ;;  %v4548_v16 = vpack.c.bf16 %v1711_v15, %v1711_v15  ;;  %v5116_v1 = vld [vmem:[#allocation2] ss:$8 sps:$4 sm:$0xff]   ;;  %v5735_v21 = vld [vmem:[#allocation2 + $0xc] sm:$0x1] }
 0x138   : > { %v4546_v0 = vpack.c.bf16 %v1709_v62, %v1709_v62  ;;  %v2166_v3 = vld [vmem:[#allocation2 + $0x8] sm:$0xf]  ;;  %v5727_v17 = vrot.slane %v2187_v9, 4  ;;  %v2223_v18 = vshrl.u32 %v5724_v51, 16  ;;  %v2226_v19 = vshll.u32 %v5724_v51, 16  ;;  %4824 = vmatprep.mubr.bf16.mxu0 %v5116_v1  ;;  %v5123_v42 = vld [vmem:[%s6329_s3 + $0xb0] sm:$0xff]  }
 0x139   : > { %v1868_v20 = vsel %vm5684_vm9, %v1798_v10, %v1867_v52  ;;  %v1871_v22 = vsel %vm5690_vm10, %v1799_v50, %v1870_v48  ;;  %v1782_v23 = vor.u32 %v1780_v61, %v1779_v13  ;;  %v1783_v26 = vrot.slane %v1779_v13, 4  ;;  %v1864_v12 = vld [vmem:[#allocation2 + $0x34] sm:$0x1]  ;;  %v5749_v58 = vld [vmem:[#allocation2 + $0x1c] sm:$0x1] }
 0x13a   : > { %1869 = vst [vmem:[#allocation2 + $0x38] sm:$0xf] %v1868_v20  ;;  %1872 = vst [vmem:[#allocation2 + $0x3c] sm:$0x1] %v1871_v22  ;;  %v1801_v27 = vshrl.u32 %v4548_v16, 16  ;;  %v1804_v2 = vshll.u32 %v4548_v16, 16  ;;  %v2193_v44 = vsel %vm5396_vm4, %v5727_v17, %v5722_v63 }
 0x13b   : > { %v1785_v28 = vshrl.u32 %v4546_v0, 16  ;;  %v1788_v29 = vshll.u32 %v4546_v0, 16  ;;  %v1856_v31 = vsel %vm5684_vm9, %v1782_v23, %v1855_v34  ;;  %v1859_v32 = vsel %vm5690_vm10, %v1783_v26, %v1858_v54  ;;  %v2447_v14 = vld [vmem:[#allocation2 + $0x8] sm:$0xe]  ;;  %v2172_v62 = vld [vmem:[#allocation2 + $0x20] sm:$0xf] }
 0x13c   : > { %v2195_v4 = vshrl.u32 %v2166_v3, 16  ;;  %v2198_v33 = vshll.u32 %v2166_v3, 16  ;;  %1857 = vst [vmem:[#allocation2 + $0x28] sm:$0xf] %v1856_v31  ;;  %1860 = vst [vmem:[#allocation2 + $0x2c] sm:$0x1] %v1859_v32  ;;  %v2476_v23 = vsel %vm5772_vm13, %v4315_v35, %v2475_v53 }
 0x13d   : > { %v1803_v41 = vrot.slane %v1801_v27, 7  ;;  %v1787_v43 = vrot.slane %v1785_v28, 7  ;;  %v5120_v46 = vld [vmem:[#allocation2 + $0x10] ss:$8 sps:$4 sm:$0xff]   ;;  %v2204_v36 = vshll.u32 %v5735_v21, 16  ;;  %v2225_v59 = vrot.slane %v2223_v18, 4 }
 0x13e   : > { %v2197_v38 = vrot.slane %v2195_v4, 4  ;;  %v2200_v56 = vrot.slane %v2198_v33, 5  ;;  %v2168_v47 = vld [vmem:[#allocation2 + $0x10] sm:$0xf]  ;;  %4825 = vmatmul.mubr.bf16.vlgmr.msra.gmra.mxu0 %v5120_v46  ;;  %v5751_v52 = vld [vmem:[#allocation2 + $0x14] sm:$0x1] }
 0x13f   : > { %v1806_v5 = vor.u32 %v1804_v2, %v1803_v41  ;;  %v1807_v9 = vrot.slane %v1803_v41, 4  ;;  %v1790_v37 = vor.u32 %v1788_v29, %v1787_v43  ;;  %v1791_v49 = vrot.slane %v1787_v43, 4  ;;  %4857 = vmatpush3.bf16.msra.mxu0 %v5623_v25  ;;  %v5126_v25 = vld [vmem:[%s6329_s3 + $0xa8] sm:$0xff]   ;;  %v5129_v26 = vld [vmem:[%s6329_s3 + $0xa0] sm:$0xff]  }
 0x140   : > { %v2201_v48 = vor.u32 %v2200_v56, %v2197_v38  ;;  %v2206_v57 = vrot.slane %v2204_v36, 5  ;;  %v2209_v8 = vshrl.u32 %v2168_v47, 16  ;;  %v2212_v60 = vshll.u32 %v2168_v47, 16  ;;  %4858 = vmatprep.subr.bf16.mxu0 %v5123_v42  ;;  %v5787_v29 = vld [vmem:[#allocation2 + $0x24] sm:$0x1] }
 0x141   : > { %v1874_v15 = vsel %vm5684_vm9, %v1806_v5, %v1873_v55  ;;  %v1877_v61 = vsel %vm5690_vm10, %v1807_v9, %v1876_v39  ;;  %v1862_v34 = vsel %vm5684_vm9, %v1790_v37, %v1861_v24  ;;  %v1865_v54 = vsel %vm5690_vm10, %v1791_v49, %v1864_v12  ;;  %v2178_v27 = vld [vmem:[#allocation2 + $0x38] sm:$0xf]  ;;  %v5130_v24 = vld [vmem:[%s6329_s3 + $0xf0] sm:$0xff]   ;;  %v5805_v9 = vld [vmem:[#allocation2 + $0x3c] sm:$0x1] }
 0x142   : > { %1875 = vst [vmem:[#allocation2 + $0x40] sm:$0xf] %v1874_v15  ;;  %1878 = vst [vmem:[#allocation2 + $0x44] sm:$0x1] %v1877_v61  ;;  %v2202_v63 = vrot.slane %v2201_v48, 4  ;;  %v2211_v51 = vrot.slane %v2209_v8, 4 }
 0x143   : > { %1863 = vst [vmem:[#allocation2 + $0x30] sm:$0xf] %v1862_v34  ;;  %1866 = vst [vmem:[#allocation2 + $0x34] sm:$0x1] %v1865_v54  ;;  %v2214_v10 = vrot.slane %v2212_v60, 5  ;;  %v2218_v50 = vshll.u32 %v5751_v52, 16  ;;  %4859 = vmatpush3.bf16.msra.mxu0 %v5123_v42 }
 0x144   : > { %v2228_v6 = vrot.slane %v2226_v19, 5  ;;  %v2232_v13 = vshll.u32 %v5749_v58, 16  ;;  %v4316_v11 = vrot.slane %v2447_v14, 9  ;;  %v2479_v16 = vrot.slane %v5735_v21, 5  ;;  %v5124_v1 = vld [vmem:[#allocation2 + $0x20] ss:$8 sps:$4 sm:$0xff]   ;;  %4860 = vmatprep.subr.bf16.mxu0 %v5126_v25 }
 0x145   : > { %v2207_v0 = vsel %vm5396_vm4, %v2202_v63, %v2206_v57  ;;  %v2215_v3 = vor.u32 %v2214_v10, %v2211_v51  ;;  %v2237_v18 = vshrl.u32 %v2172_v62, 16  ;;  %v2220_v19 = vrot.slane %v2218_v50, 5  ;;  %v2174_v21 = vld [vmem:[#allocation2 + $0x28] sm:$0xf]  ;;  %4828 = vmatprep.mubr.bf16.mxu0 %v5124_v1  ;;  %v5789_v55 = vld [vmem:[#allocation2 + $0x2c] sm:$0x1] }
 0x146   : > { %v4303_v20 = vcombine.low %v2193_v44, %v2207_v0  ;;  %v2229_v22 = vor.u32 %v2228_v6, %v2225_v59  ;;  %v2480_v28 = vsel %vm5772_vm13, %v4316_v11, %v2479_v16  ;;  %v2240_v7 = vshll.u32 %v2172_v62, 16  ;;  %v5131_v42 = vld [vmem:[%s6329_s3 + $0x98] sm:$0xff]   ;;  %v5132_v62 = vld [vmem:[%s6329_s3 + $0xe8] sm:$0xff]  }
 0x147   : > { %v2216_v2 = vrot.slane %v2215_v3, 4  ;;  %v2239_v31 = vrot.slane %v2237_v18, 4  ;;  %v2234_v32 = vrot.slane %v2232_v13, 5  ;;  %v2251_v35 = vshrl.u32 %v2174_v21, 16  ;;  %4861 = vmatpush3.bf16.msra.mxu0 %v5126_v25  ;;  %v5135_v18 = vld [vmem:[%s6329_s3 + $0xe0] sm:$0xff]  }
 0x148   : > { %4848 = vmatprep.mubr.bf16.mxu1 %v4303_v20  ;;  %v2230_v45 = vrot.slane %v2229_v22, 4  ;;  %v2254_v53 = vshll.u32 %v2174_v21, 16  ;;  %v2242_v12 = vrot.slane %v2240_v7, 5  ;;  %v2279_v4 = vshrl.u32 %v2178_v27, 16  ;;  %4862 = vmatprep.subr.bf16.mxu0 %v5129_v26  ;;  %v5136_v20 = vld [vmem:[%s6329_s3 + $0x88] sm:$0xff]  }
 0x149   : > { %v2221_v39 = vsel %vm5396_vm4, %v2216_v2, %v2220_v19  ;;  %v4339_v43 = vcombine.low %v2476_v23, %v2480_v28  ;;  %v2246_v46 = vshll.u32 %v5787_v29, 16  ;;  %v2253_v44 = vrot.slane %v2251_v35, 4  ;;  %v2829_v22 = vld [vmem:[#allocation2 + $0x8] sm:$0xf]  ;;  %v2831_v21 = vld [vmem:[#allocation2 + $0x10] sm:$0xf] }
 0x14a   : > { %v5127_v33 = vld [vmem:[#allocation2 + $0x30] ss:$8 sps:$4 sm:$0xff]   ;;  %v2235_v41 = vsel %vm5396_vm4, %v2230_v45, %v2234_v32  ;;  %v2243_v56 = vor.u32 %v2242_v12, %v2239_v31  ;;  %v2256_v36 = vrot.slane %v2254_v53, 5  ;;  %v2260_v47 = vshll.u32 %v5789_v55, 16  ;;  %v5803_v5 = vld [vmem:[#allocation2 + $0x34] sm:$0x1] }
 0x14b   : > { %v4304_v38 = vcombine.low %v2221_v39, %v2235_v41  ;;  %v2176_v59 = vld [vmem:[#allocation2 + $0x30] sm:$0xf]  ;;  %4829 = vmatmul.mubr.bf16.gmra.mxu0 %v5127_v33  ;;  %v2281_v8 = vrot.slane %v2279_v4, 4  ;;  %v2282_v60 = vshll.u32 %v2178_v27, 16  ;;  %v2248_v14 = vrot.slane %v2246_v46, 5  ;;  %v5137_v2 = vld [vmem:[%s6329_s3 + $0xd8] sm:$0xff]  }
 0x14c   : > { %v2265_v37 = vshrl.u32 %v2176_v59, 16  ;;  %v2268_v49 = vshll.u32 %v2176_v59, 16  ;;  %4872 = vmatprep.mubr.bf16.mxu0 %v4339_v43  ;;  %v2244_v48 = vrot.slane %v2243_v56, 4  ;;  %v2257_v57 = vor.u32 %v2256_v36, %v2253_v44  ;;  %4863 = vmatpush3.bf16.msra.mxu0 %v5129_v26  ;;  %v2448_v26 = vld [vmem:[#allocation2 + $0x10] sm:$0xe]  ;;  %v5138_v28 = vld [vmem:[%s6329_s3 + $0x80] sm:$0xff]  }
 0x14d   : > { %4849 = vmatmul.mubr.bf16.vlgmr.msra.gmra.mxu1 %v4304_v38  ;;  %v2274_v34 = vshll.u32 %v5803_v5, 16  ;;  %v2262_v25 = vrot.slane %v2260_v47, 5  ;;  %4864 = vmatprep.subr.bf16.mxu0 %v5131_v42  ;;  %v2284_v63 = vrot.slane %v2282_v60, 5  ;;  %v2288_v51 = vshll.u32 %v5805_v9, 16  ;;  %v2451_v31 = vld [vmem:[#allocation2 + $0x28] sm:$0xe] }
 0x14e   : > { %4881 = vmatpush3.bf16.msra.mxu1 %v5639_v30  ;;  %v2267_v15 = vrot.slane %v2265_v37, 4  ;;  %v2270_v61 = vrot.slane %v2268_v49, 5  ;;  %v2258_v54 = vrot.slane %v2257_v57, 4  ;;  %v5134_v30 = vld [vmem:[%s6329_s3 + $0x90] sm:$0xff]   ;;  %v2249_v50 = vsel %vm5396_vm4, %v2244_v48, %v2248_v14  ;;  %v2449_v45 = vld [vmem:[#allocation2 + $0x18] sm:$0xe] }
 0x14f   : > { %4882 = vmatprep.subr.bf16.mxu1 %v5130_v24  ;;  %v2285_v13 = vor.u32 %v2284_v63, %v2281_v8  ;;  %v2276_v1 = vrot.slane %v2274_v34, 5  ;;  %v2290_v3 = vrot.slane %v2288_v51, 5  ;;  %v5133_v7 = vld [vmem:[#allocation2 + $0x8] ss:$8 sps:$4 sm:$0xff]   ;;  %v2846_v32 = vshrl.u32 %v2829_v22, 16  ;;  %v5140_v38 = vld [vmem:[%s6329_s3 + $0x138] sm:$0xff]  }
 0x150   : > { %v2271_v10 = vor.u32 %v2270_v61, %v2267_v15  ;;  %v2263_v6 = vsel %vm5396_vm4, %v2258_v54, %v2262_v25  ;;  %4865 = vmatpush3.bf16.msra.mxu0 %v5131_v42  ;;  %v2849_v35 = vshll.u32 %v2829_v22, 16  ;;  %v4317_v53 = vrot.slane %v2448_v26, 9  ;;  %v5848_v59 = vld [vmem:[#allocation2 + $0x14] sm:$0x1]  ;;  %v2452_v49 = vld [vmem:[#allocation2 + $0x30] sm:$0xe] }
 0x151   : > { %v4305_v11 = vcombine.low %v2249_v50, %v2263_v6  ;;  %v2286_v0 = vrot.slane %v2285_v13, 4  ;;  %4866 = vmatprep.subr.bf16.mxu0 %v5134_v30  ;;  %v2483_v39 = vrot.slane %v5751_v52, 5  ;;  %v2860_v12 = vshrl.u32 %v2831_v21, 16  ;;  %v5139_v52 = vld [vmem:[%s6329_s3 + $0xd0] sm:$0xff]   ;;  %v5854_v8 = vld [vmem:[#allocation2 + $0xc] sm:$0x1] }
 0x152   : > { %4883 = vmatpush3.bf16.msra.mxu1 %v5130_v24  ;;  %v2272_v16 = vrot.slane %v2271_v10, 4  ;;  %v2450_v24 = vld [vmem:[#allocation2 + $0x20] sm:$0xe]  ;;  %v2863_v42 = vshll.u32 %v2831_v21, 16  ;;  %v4320_v4 = vrot.slane %v2451_v31, 9  ;;  %v2495_v33 = vrot.slane %v5789_v55, 5 }
 0x153   : > { %4884 = vmatprep.subr.bf16.mxu1 %v5132_v62  ;;  %4852 = vmatprep.mubr.bf16.mxu1 %v4305_v11  ;;  %v2291_v23 = vsel %vm5396_vm4, %v2286_v0, %v2290_v3  ;;  %v4318_v41 = vrot.slane %v2449_v45, 9  ;;  %v2487_v43 = vrot.slane %v5749_v58, 5  ;;  %v2862_v46 = vrot.slane %v2860_v12, 4  ;;  %v5141_v14 = vld [vmem:[%s6329_s3 + $0xc8] sm:$0xff]   ;;  %v2453_v15 = vld [vmem:[#allocation2 + $0x38] sm:$0xe] }
 0x154   : > { %v2277_v19 = vsel %vm5396_vm4, %v2272_v16, %v2276_v1  ;;  %4867 = vmatpush3.bf16.msra.mxu0 %v5134_v30  ;;  %v2865_v44 = vrot.slane %v2863_v42, 5  ;;  %v4319_v56 = vrot.slane %v2450_v24, 9  ;;  %v2491_v55 = vrot.slane %v5787_v29, 5  ;;  %v5142_v25 = vld [vmem:[%s6329_s3 + $0x130] sm:$0xff]   ;;  %v5143_v6 = vld [vmem:[%s6329_s3 + $0xc0] sm:$0xff]   ;;  %v5144_v16 = vld [vmem:[%s6329_s3 + $0x128] sm:$0xff]  }
 0x155   : > { %v4306_v27 = vcombine.low %v2277_v19, %v2291_v23  ;;  %4868 = vmatprep.subr.bf16.mxu0 %v5136_v20  ;;  %v2848_v36 = vrot.slane %v2846_v32, 4  ;;  %v2851_v47 = vrot.slane %v2849_v35, 5  ;;  %v2484_v58 = vsel %vm5772_vm13, %v4317_v53, %v2483_v39  ;;  %v5148_v22 = vld [vmem:[%s6329_s3 + $0x120] sm:$0xff]   ;;  %v5149_v26 = vld [vmem:[%s6329_s3 + $0x170] sm:$0xff]   ;;  %v2837_v53 = vld [vmem:[#allocation2 + $0x28] sm:$0xf] }
 0x156   : > { %4885 = vmatpush3.bf16.msra.mxu1 %v5132_v62  ;;  %v2496_v37 = vsel %vm5772_vm13, %v4320_v4, %v2495_v33  ;;  %v2866_v48 = vor.u32 %v2865_v44, %v2862_v46  ;;  %v2488_v57 = vsel %vm5772_vm13, %v4318_v41, %v2487_v43  ;;  %v2492_v60 = vsel %vm5772_vm13, %v4319_v56, %v2491_v55  ;;  %v5145_v23 = vld [vmem:[#allocation2 + $0x18] ss:$8 sps:$4 sm:$0xff]   ;;  %v3112_v21 = vld [vmem:[#allocation2 + $0x10] sm:$0xe]  ;;  %v5152_v12 = vld [vmem:[%s6329_s3 + $0x168] sm:$0xff]  }
 0x157   : > { %4886 = vmatprep.subr.bf16.mxu1 %v5135_v18  ;;  %4853 = vmatmul.mubr.bf16.gmra.mxu1 %v4306_v27  ;;  %v4340_v29 = vcombine.low %v2484_v58, %v2488_v57  ;;  %v2852_v61 = vor.u32 %v2851_v47, %v2848_v36  ;;  %v2869_v34 = vshll.u32 %v5848_v59, 16  ;;  %v4341_v54 = vcombine.low %v2492_v60, %v2496_v37  ;;  %v5147_v27 = vld [vmem:[#allocation2 + $0x28] ss:$8 sps:$4 sm:$0xff]   ;;  %v2835_v31 = vld [vmem:[#allocation2 + $0x20] sm:$0xf] }
 0x158   : > { %4896 = vmatprep.mubr.bf16.mxu1 %v5133_v7  ;;  %4869 = vmatpush3.bf16.msra.mxu0 %v5136_v20  ;;  %v4321_v62 = vrot.slane %v2452_v49, 9  ;;  %v2499_v63 = vrot.slane %v5803_v5, 5  ;;  %v2855_v51 = vshll.u32 %v5854_v8, 16  ;;  %v2867_v30 = vrot.slane %v2866_v48, 4  ;;  %v5146_v20 = vld [vmem:[%s6329_s3 + $0x178] sm:$0xff]   ;;  %v5153_v44 = vld [vmem:[%s6329_s3 + $0x110] sm:$0xff]  }
 0x159   : > { %4870 = vmatprep.subr.bf16.mxu0 %v5138_v28  ;;  %v4322_v10 = vrot.slane %v2453_v15, 9  ;;  %v2503_v50 = vrot.slane %v5805_v9, 5  ;;  %v2853_v13 = vrot.slane %v2852_v61, 4  ;;  %v2871_v11 = vrot.slane %v2869_v34, 5  ;;  %v2833_v7 = vld [vmem:[#allocation2 + $0x18] sm:$0xf] }
 0x15a   : > { %4887 = vmatpush3.bf16.msra.mxu1 %v5135_v18  ;;  %v2500_v5 = vsel %vm5772_vm13, %v4321_v62, %v2499_v63  ;;  %v2857_v1 = vrot.slane %v2855_v51, 5  ;;  %v2839_v45 = vld [vmem:[#allocation2 + $0x30] sm:$0xf]  ;;  %v4408_v32 = vrot.slane %v3112_v21, 9  ;;  %v3141_v35 = vrot.slane %v5848_v59, 5  ;;  %v5154_v48 = vld [vmem:[%s6329_s3 + $0x160] sm:$0xff]  }
 0x15b   : > { %4888 = vmatprep.subr.bf16.mxu1 %v5137_v2  ;;  %v2872_v9 = vsel %vm5396_vm4, %v2867_v30, %v2871_v11  ;;  %v2504_v0 = vsel %vm5772_vm13, %v4322_v10, %v2503_v50  ;;  %v2888_v39 = vshrl.u32 %v2835_v31, 16  ;;  %v2891_v24 = vshll.u32 %v2835_v31, 16  ;;  %v2843_v59 = vld [vmem:[#allocation2 + $0x40] sm:$0xf]  ;;  %v5155_v57 = vld [vmem:[%s6329_s3 + $0x108] sm:$0xff]   ;;  %v5156_v10 = vld [vmem:[%s6329_s3 + $0x158] sm:$0xff]  }
 0x15c   : > { %4871 = vmatpush3.bf16.msra.mxu0 %v5138_v28  ;;  %v4342_v3 = vcombine.low %v2500_v5, %v2504_v0  ;;  %v2858_v18 = vsel %vm5396_vm4, %v2853_v13, %v2857_v1  ;;  %v3111_v28 = vld [vmem:[#allocation2 + $0x8] sm:$0xe]  ;;  %v2916_v42 = vshrl.u32 %v2839_v45, 16  ;;  %v2919_v4 = vshll.u32 %v2839_v45, 16  ;;  %v5151_v37 = vld [vmem:[#allocation2 + $0x38] ss:$8 sps:$4 sm:$0xff]  }
 0x15d   : > { %4904 = vmatprep.subr.bf16.mxu0 %v5140_v38  ;;  %v4395_v19 = vcombine.low %v2858_v18, %v2872_v9  ;;  %v4407_v33 = vrot.slane %v3111_v28, 9  ;;  %v3137_v41 = vrot.slane %v5854_v8, 5  ;;  %v2874_v43 = vshrl.u32 %v2833_v7, 16  ;;  %v2841_v34 = vld [vmem:[#allocation2 + $0x38] sm:$0xf] }
 0x15e   : > { %4889 = vmatpush3.bf16.msra.mxu1 %v5137_v2  ;;  %v5150_v2 = vld [vmem:[%s6329_s3 + $0x118] sm:$0xff]   ;;  %v2877_v46 = vshll.u32 %v2833_v7, 16  ;;  %v3142_v56 = vsel %vm5772_vm13, %v4408_v32, %v3141_v35  ;;  %v2890_v55 = vrot.slane %v2888_v39, 4  ;;  %v2893_v36 = vrot.slane %v2891_v24, 5  ;;  %v5922_v13 = vld [vmem:[#allocation2 + $0x2c] sm:$0x1] }
 0x15f   : > { %4890 = vmatprep.subr.bf16.mxu1 %v5139_v52  ;;  %4873 = vmatmul.mubr.bf16.vlgmr.msra.gmra.mxu0 %v4340_v29  ;;  %v2918_v47 = vrot.slane %v2916_v42, 4  ;;  %v2921_v58 = vrot.slane %v2919_v4, 5  ;;  %v3138_v49 = vsel %vm5772_vm13, %v4407_v33, %v3137_v41  ;;  %v2876_v8 = vrot.slane %v2874_v43, 4  ;;  %v5916_v51 = vld [vmem:[#allocation2 + $0x1c] sm:$0x1]  ;;  %v5160_v33 = vld [vmem:[%s6329_s3 + $0x148] sm:$0xff]  }
 0x160   : > { %4876 = vmatprep.mubr.bf16.mxu0 %v4341_v54  ;;  %4905 = vmatpush3.bf16.msra.mxu0 %v5140_v38  ;;  %v2905_v38 = vshll.u32 %v2837_v53, 16  ;;  %v2879_v29 = vrot.slane %v2877_v46, 5  ;;  %v4431_v60 = vcombine.low %v3138_v49, %v3142_v56  ;;  %v2894_v54 = vor.u32 %v2893_v36, %v2890_v55  ;;  %v5159_v28 = vld [vmem:[%s6329_s3 + $0x1b8] sm:$0xff]   ;;  %v5936_v45 = vld [vmem:[#allocation2 + $0x44] sm:$0x1]  ;;  %v5161_v36 = vld [vmem:[%s6329_s3 + $0x1b0] sm:$0xff]  }
 0x161   : > { %4906 = vmatprep.subr.bf16.mxu0 %v5142_v25  ;;  %v2944_v62 = vshrl.u32 %v2843_v59, 16  ;;  %v2947_v63 = vshll.u32 %v2843_v59, 16  ;;  %v2922_v30 = vor.u32 %v2921_v58, %v2918_v47  ;;  %v2930_v11 = vshrl.u32 %v2841_v34, 16  ;;  %v3492_v42 = vld [vmem:[#allocation2 + $0x10] sm:$0xf]  ;;  %v5162_v49 = vld [vmem:[%s6329_s3 + $0x140] sm:$0xff]  }
 0x162   : > { %4891 = vmatpush3.bf16.msra.mxu1 %v5139_v52  ;;  %v2902_v52 = vshrl.u32 %v2837_v53, 16  ;;  %v2907_v61 = vrot.slane %v2905_v38, 5  ;;  %v2880_v50 = vor.u32 %v2879_v29, %v2876_v8  ;;  %v2933_v5 = vshll.u32 %v2841_v34, 16  ;;  %v5940_v53 = vld [vmem:[#allocation2 + $0x3c] sm:$0x1] }
 0x163   : > { %4892 = vmatprep.subr.bf16.mxu1 %v5141_v14  ;;  %v2883_v0 = vshll.u32 %v5916_v51, 16  ;;  %v2946_v18 = vrot.slane %v2944_v62, 4  ;;  %v2953_v43 = vshll.u32 %v5936_v45, 16  ;;  %v3114_v38 = vld [vmem:[#allocation2 + $0x20] sm:$0xe]  ;;  %v3509_v59 = vshrl.u32 %v3492_v42, 16 }
 0x164   : > { %4907 = vmatpush3.bf16.msra.mxu0 %v5142_v25  ;;  %v2904_v15 = vrot.slane %v2902_v52, 4  ;;  %v5914_v25 = vld [vmem:[#allocation2 + $0x34] sm:$0x1]  ;;  %v2939_v52 = vshll.u32 %v5940_v53, 16  ;;  %v3494_v56 = vld [vmem:[#allocation2 + $0x18] sm:$0xf] }
 0x165   : > { %4908 = vmatprep.subr.bf16.mxu0 %v5144_v16  ;;  %v2925_v9 = vshll.u32 %v5914_v25, 16  ;;  %v2885_v32 = vrot.slane %v2883_v0, 5  ;;  %v3116_v58 = vld [vmem:[#allocation2 + $0x30] sm:$0xe]  ;;  %v2955_v8 = vrot.slane %v2953_v43, 5  ;;  %v4410_v34 = vrot.slane %v3114_v38, 9 }
 0x166   : > { %4893 = vmatpush3.bf16.msra.mxu1 %v5141_v14  ;;  %v5912_v14 = vld [vmem:[#allocation2 + $0x24] sm:$0x1]  ;;  %v2908_v1 = vor.u32 %v2907_v61, %v2904_v15  ;;  %v3115_v29 = vld [vmem:[#allocation2 + $0x28] sm:$0xe]  ;;  %v3526_v15 = vshll.u32 %v3494_v56, 16  ;;  %v2941_v61 = vrot.slane %v2939_v52, 5 }
 0x167   : > { %4894 = vmatprep.subr.bf16.mxu1 %v5143_v6  ;;  %4877 = vmatmul.mubr.bf16.gmra.mxu0 %v4342_v3  ;;  %v2895_v3 = vrot.slane %v2894_v54, 4  ;;  %v2927_v7 = vrot.slane %v2925_v9, 5  ;;  %v3149_v54 = vrot.slane %v5912_v14, 5  ;;  %v4412_v62 = vrot.slane %v3116_v58, 9  ;;  %v5169_v43 = vld [vmem:[%s6329_s3 + $0x1e8] sm:$0xff]  }
 0x168   : > { %4920 = vmatprep.mubr.bf16.mxu0 %v4395_v19  ;;  %4909 = vmatpush3.bf16.msra.mxu0 %v5144_v16  ;;  %v5157_v16 = vld [vmem:[%s6329_s3 + $0x100] sm:$0xff]   ;;  %v2911_v19 = vshll.u32 %v5922_v13, 16  ;;  %v2909_v31 = vrot.slane %v2908_v1, 4  ;;  %v5165_v1 = vld [vmem:[%s6329_s3 + $0x1f8] sm:$0xff]   ;;  %v3153_v9 = vrot.slane %v5922_v13, 5 }
 0x169   : > { %4910 = vmatprep.subr.bf16.mxu0 %v5148_v22 }
 0x16a   : > { %4895 = vmatpush3.bf16.msra.mxu1 %v5143_v6  ;;  %v2897_v6 = vshll.u32 %v5912_v14, 16  ;;  %v2913_v24 = vrot.slane %v2911_v19, 5 }
 0x16b   : > { %4928 = vmatprep.subr.bf16.mxu1 %v5146_v20 }
 0x16c   : > { %4911 = vmatpush3.bf16.msra.mxu0 %v5148_v22  ;;  %v2923_v22 = vrot.slane %v2922_v30, 4  ;;  %v2899_v21 = vrot.slane %v2897_v6, 5  ;;  %v5163_v30 = vld [vmem:[%s6329_s3 + $0x1a8] sm:$0xff]  }
 0x16d   : > { %4897 = vmatmul.mubr.bf16.vlgmr.msra.gmra.mxu1 %v5145_v23  ;;  %4912 = vmatprep.subr.bf16.mxu0 %v5150_v2  ;;  %v5158_v23 = vld [vmem:[%s6329_s3 + $0x150] sm:$0xff]  }
 0x16e   : > { %4900 = vmatprep.mubr.bf16.mxu1 %v5147_v27  ;;  %4929 = vmatpush3.bf16.msra.mxu1 %v5146_v20  ;;  %v2949_v20 = vrot.slane %v2947_v63, 5  ;;  %v2932_v27 = vrot.slane %v2930_v11, 4  ;;  %v2900_v35 = vsel %vm5396_vm4, %v2895_v3, %v2899_v21  ;;  %v3528_v3 = vrot.slane %v3526_v15, 5  ;;  %v5984_v21 = vld [vmem:[#allocation2 + $0x1c] sm:$0x1] }
 0x16f   : > { %4930 = vmatprep.subr.bf16.mxu1 %v5149_v26  ;;  %v3502_v15 = vld [vmem:[#allocation2 + $0x38] sm:$0xf] }
 0x170   : > { %4913 = vmatpush3.bf16.msra.mxu0 %v5150_v2  ;;  %v2935_v2 = vrot.slane %v2933_v5, 5  ;;  %v2950_v39 = vor.u32 %v2949_v20, %v2946_v18  ;;  %v3145_v5 = vrot.slane %v5916_v51, 5  ;;  %v3150_v18 = vsel %vm5772_vm13, %v4410_v34, %v3149_v54  ;;  %v5975_v20 = vld [vmem:[#allocation2 + $0x14] sm:$0x1]  ;;  %v5164_v51 = vld [vmem:[#allocation2 + $0x10] ss:$8 sps:$4 sm:$0xff]  }
 0x171   : > { %4914 = vmatprep.subr.bf16.mxu0 %v5153_v44 }
 0x172   : > { %4931 = vmatpush3.bf16.msra.mxu1 %v5149_v26  ;;  %v2881_v26 = vrot.slane %v2880_v50, 4  ;;  %v2936_v41 = vor.u32 %v2935_v2, %v2932_v27  ;;  %v2951_v47 = vrot.slane %v2950_v39, 4  ;;  %v3511_v50 = vrot.slane %v3509_v59, 4  ;;  %v5172_v59 = vld [vmem:[%s6329_s3 + $0x188] sm:$0xff]  }
 0x173   : > { %4932 = vmatprep.subr.bf16.mxu1 %v5152_v12 }
 0x174   : > { %4915 = vmatpush3.bf16.msra.mxu0 %v5153_v44  ;;  %v2886_v4 = vsel %vm5396_vm4, %v2881_v26, %v2885_v32  ;;  %v2914_v44 = vsel %vm5396_vm4, %v2909_v31, %v2913_v24  ;;  %v2956_v63 = vsel %vm5396_vm4, %v2951_v47, %v2955_v8  ;;  %v3117_v31 = vld [vmem:[#allocation2 + $0x38] sm:$0xe]  ;;  %v3165_v24 = vrot.slane %v5936_v45, 5  ;;  %v5171_v47 = vld [vmem:[%s6329_s3 + $0x1e0] sm:$0xff]   ;;  %v3506_v8 = vld [vmem:[#allocation2 + $0x48] sm:$0xf] }
 0x175   : > { %4901 = vmatmul.mubr.bf16.gmra.mxu1 %v5151_v37  ;;  %4916 = vmatprep.subr.bf16.mxu0 %v5155_v57  ;;  %v4396_v46 = vcombine.low %v2886_v4, %v2900_v35  ;;  %v3512_v37 = vshll.u32 %v3492_v42, 16  ;;  %v3532_v4 = vshll.u32 %v5984_v21, 16 }
 0x176   : > { %4933 = vmatpush3.bf16.msra.mxu1 %v5152_v12  ;;  %4944 = vmatprep.mubr.bf16.mxu1 %v4431_v60  ;;  %v2928_v12 = vsel %vm5396_vm4, %v2923_v22, %v2927_v7  ;;  %v3523_v60 = vshrl.u32 %v3494_v56, 16  ;;  %v5166_v22 = vld [vmem:[%s6329_s3 + $0x1a0] sm:$0xff]   ;;  %v3518_v7 = vshll.u32 %v5975_v20, 16 }
 0x177   : > { %4934 = vmatprep.subr.bf16.mxu1 %v5154_v48  ;;  %v4397_v55 = vcombine.low %v2914_v44, %v2928_v12  ;;  %v3514_v6 = vrot.slane %v3512_v37, 5  ;;  %v5168_v12 = vld [vmem:[%s6329_s3 + $0x198] sm:$0xff]   ;;  %v3534_v38 = vrot.slane %v3532_v4, 5  ;;  %v3498_v37 = vld [vmem:[#allocation2 + $0x28] sm:$0xf] }
 0x178   : > { %4917 = vmatpush3.bf16.msra.mxu0 %v5155_v57  ;;  %v2937_v57 = vrot.slane %v2936_v41, 4  ;;  %v3525_v0 = vrot.slane %v3523_v60, 4  ;;  %v3161_v41 = vrot.slane %v5940_v53, 5  ;;  %v3520_v45 = vrot.slane %v3518_v7, 5  ;;  %v5170_v53 = vld [vmem:[%s6329_s3 + $0x190] sm:$0xff]  }
 0x179   : > { %4918 = vmatprep.subr.bf16.mxu0 %v5157_v16  ;;  %v3515_v13 = vor.u32 %v3514_v6, %v3511_v50  ;;  %v3554_v60 = vshll.u32 %v3498_v37, 16  ;;  %v3579_v50 = vshrl.u32 %v3502_v15, 16  ;;  %v3582_v6 = vshll.u32 %v3502_v15, 16  ;;  %v5176_v7 = vld [vmem:[#allocation2 + $0x20] ss:$8 sps:$4 sm:$0xff]  }
 0x17a   : > { %4935 = vmatpush3.bf16.msra.mxu1 %v5154_v48  ;;  %v3113_v48 = vld [vmem:[#allocation2 + $0x18] sm:$0xe]  ;;  %v2942_v14 = vsel %vm5396_vm4, %v2937_v57, %v2941_v61  ;;  %v3529_v32 = vor.u32 %v3528_v3, %v3525_v0  ;;  %v3496_v57 = vld [vmem:[#allocation2 + $0x20] sm:$0xf]  ;;  %v6045_v4 = vld [vmem:[#allocation2 + $0x3c] sm:$0x1] }
 0x17b   : > { %4936 = vmatprep.subr.bf16.mxu1 %v5156_v10  ;;  %v4409_v11 = vrot.slane %v3113_v48, 9  ;;  %v3516_v42 = vrot.slane %v3515_v13, 4  ;;  %v5173_v48 = vld [vmem:[%s6329_s3 + $0x1d8] sm:$0xff]   ;;  %v5174_v61 = vld [vmem:[%s6329_s3 + $0x180] sm:$0xff]   ;;  %v3584_v13 = vrot.slane %v3582_v6, 5 }
 0x17c   : > { %4919 = vmatpush3.bf16.msra.mxu0 %v5157_v16  ;;  %v4411_v16 = vrot.slane %v3115_v29, 9  ;;  %v3551_v29 = vshrl.u32 %v3498_v37, 16 }
 0x17d   : > { %4952 = vmatprep.subr.bf16.mxu0 %v5159_v28  ;;  %v3146_v26 = vsel %vm5772_vm13, %v4409_v11, %v3145_v5  ;;  %v3521_v52 = vsel %vm5396_vm4, %v3516_v42, %v3520_v45  ;;  %v3556_v5 = vrot.slane %v3554_v60, 5  ;;  %v3775_v42 = vld [vmem:[#allocation2 + $0x18] sm:$0xe]  ;;  %v3800_v45 = vrot.slane %v5975_v20, 5 }
 0x17e   : > { %4937 = vmatpush3.bf16.msra.mxu1 %v5156_v10  ;;  %v3157_v10 = vrot.slane %v5914_v25, 5  ;;  %v4398_v25 = vcombine.low %v2942_v14, %v2956_v63  ;;  %v4432_v27 = vcombine.low %v3146_v26, %v3150_v18  ;;  %v3154_v2 = vsel %vm5772_vm13, %v4411_v16, %v3153_v9  ;;  %v5177_v16 = vld [vmem:[%s6329_s3 + $0x238] sm:$0xff]   ;;  %v3504_v9 = vld [vmem:[#allocation2 + $0x40] sm:$0xf] }
 0x17f   : > { %4938 = vmatprep.subr.bf16.mxu1 %v5158_v23  ;;  %4921 = vmatmul.mubr.bf16.vlgmr.msra.gmra.mxu0 %v4396_v46  ;;  %v3530_v46 = vrot.slane %v3529_v32, 4  ;;  %v3540_v63 = vshll.u32 %v3496_v57, 16  ;;  %v3553_v11 = vrot.slane %v3551_v29, 4  ;;  %v3610_v18 = vshll.u32 %v3506_v8, 16  ;;  %v5178_v32 = vld [vmem:[#allocation2 + $0x30] ss:$8 sps:$4 sm:$0xff]  }
 0x180   : > { %4924 = vmatprep.mubr.bf16.mxu0 %v4397_v55  ;;  %4953 = vmatpush3.bf16.msra.mxu0 %v5159_v28  ;;  %v3158_v19 = vsel %vm5772_vm13, %v4412_v62, %v3157_v10  ;;  %v5167_v28 = vld [vmem:[%s6329_s3 + $0x1f0] sm:$0xff]   ;;  %v3537_v62 = vshrl.u32 %v3496_v57, 16  ;;  %v3588_v20 = vshll.u32 %v6045_v4, 16  ;;  %v6062_v29 = vld [vmem:[#allocation2 + $0x4c] sm:$0x1] }
 0x181   : > { %4954 = vmatprep.subr.bf16.mxu0 %v5161_v36  ;;  %v4433_v35 = vcombine.low %v3154_v2, %v3158_v19  ;;  %v5175_v10 = vld [vmem:[%s6329_s3 + $0x1d0] sm:$0xff]   ;;  %v3542_v3 = vrot.slane %v3540_v63, 5  ;;  %v3557_v26 = vor.u32 %v3556_v5, %v3553_v11 }
 0x182   : > { %4939 = vmatpush3.bf16.msra.mxu1 %v5158_v23  ;;  %v3118_v23 = vld [vmem:[#allocation2 + $0x40] sm:$0xe]  ;;  %v3539_v0 = vrot.slane %v3537_v62, 4  ;;  %v5180_v19 = vld [vmem:[%s6329_s3 + $0x230] sm:$0xff]  }
 0x183   : > { %4940 = vmatprep.subr.bf16.mxu1 %v5160_v33  ;;  %v4414_v39 = vrot.slane %v3118_v23, 9  ;;  %v3581_v23 = vrot.slane %v3579_v50, 4  ;;  %v6040_v2 = vld [vmem:[#allocation2 + $0x34] sm:$0x1] }
 0x184   : > { %4955 = vmatpush3.bf16.msra.mxu0 %v5161_v36  ;;  %v3535_v36 = vsel %vm5396_vm4, %v3530_v46, %v3534_v38  ;;  %v3574_v46 = vshll.u32 %v6040_v2, 16  ;;  %v3558_v38 = vrot.slane %v3557_v26, 4  ;;  %v3777_v26 = vld [vmem:[#allocation2 + $0x28] sm:$0xe] }
 0x185   : > { %4956 = vmatprep.subr.bf16.mxu0 %v5163_v30  ;;  %v3166_v44 = vsel %vm5772_vm13, %v4414_v39, %v3165_v24  ;;  %v4487_v58 = vcombine.low %v3521_v52, %v3535_v36  ;;  %v3543_v24 = vor.u32 %v3542_v3, %v3539_v0  ;;  %v4500_v36 = vrot.slane %v3775_v42, 9  ;;  %v5185_v3 = vld [vmem:[%s6329_s3 + $0x218] sm:$0xff]  }
 0x186   : > { %4941 = vmatpush3.bf16.msra.mxu1 %v5160_v33  ;;  %v4413_v33 = vrot.slane %v3117_v31, 9  ;;  %v3596_v31 = vshll.u32 %v3504_v9, 16 }
 0x187   : > { %4942 = vmatprep.subr.bf16.mxu1 %v5162_v49  ;;  %4925 = vmatmul.mubr.bf16.gmra.mxu0 %v4398_v25 }
 0x188   : > { %4968 = vmatprep.mubr.bf16.mxu0 %v5164_v51  ;;  %4957 = vmatpush3.bf16.msra.mxu0 %v5163_v30  ;;  %v3162_v56 = vsel %vm5772_vm13, %v4413_v33, %v3161_v41  ;;  %v3607_v30 = vshrl.u32 %v3506_v8, 16  ;;  %v5179_v51 = vld [vmem:[%s6329_s3 + $0x1c8] sm:$0xff]   ;;  %v3612_v33 = vrot.slane %v3610_v18, 5  ;;  %v5181_v41 = vld [vmem:[%s6329_s3 + $0x1c0] sm:$0xff]  }
 0x189   : > { %4958 = vmatprep.subr.bf16.mxu0 %v5166_v22  ;;  %v4434_v55 = vcombine.low %v3162_v56, %v3166_v44  ;;  %v3585_v44 = vor.u32 %v3584_v13, %v3581_v23  ;;  %v3598_v56 = vrot.slane %v3596_v31, 5  ;;  %v6060_v8 = vld [vmem:[#allocation2 + $0x44] sm:$0x1]  ;;  %v5187_v13 = vld [vmem:[%s6329_s3 + $0x208] sm:$0xff]   ;;  %v4502_v31 = vrot.slane %v3777_v26, 9 }
 0x18a   : > { %4943 = vmatpush3.bf16.msra.mxu1 %v5162_v49  ;;  %v3500_v49 = vld [vmem:[#allocation2 + $0x30] sm:$0xf]  ;;  %v6030_v25 = vrot.slane %v3607_v30, 4  ;;  %v3590_v30 = vrot.slane %v3588_v20, 5  ;;  %v3602_v11 = vshll.u32 %v6060_v8, 16 }
 0x18b   : > { %4976 = vmatprep.subr.bf16.mxu1 %v5165_v1  ;;  %v3565_v34 = vshrl.u32 %v3500_v49, 16  ;;  %v3568_v54 = vshll.u32 %v3500_v49, 16  ;;  %v3586_v57 = vrot.slane %v3585_v44, 4 }
 0x18c   : > { %4959 = vmatpush3.bf16.msra.mxu0 %v5166_v22  ;;  %v6038_v22 = vld [vmem:[#allocation2 + $0x2c] sm:$0x1]  ;;  %v3613_v60 = vor.u32 %v3612_v33, %v6030_v25  ;;  %v3604_v25 = vrot.slane %v3602_v11, 5 }
 0x18d   : > { %4945 = vmatmul.mubr.bf16.vlgmr.msra.gmra.mxu1 %v4432_v27  ;;  %4960 = vmatprep.subr.bf16.mxu0 %v5168_v12  ;;  %v3567_v14 = vrot.slane %v3565_v34, 4  ;;  %v3774_v27 = vld [vmem:[#allocation2 + $0x10] sm:$0xe]  ;;  %v3616_v34 = vshll.u32 %v6062_v29, 16 }
 0x18e   : > { %4948 = vmatprep.mubr.bf16.mxu1 %v4433_v35  ;;  %4977 = vmatpush3.bf16.msra.mxu1 %v5165_v1  ;;  %v3570_v1 = vrot.slane %v3568_v54, 5  ;;  %v6042_v35 = vld [vmem:[#allocation2 + $0x24] sm:$0x1]  ;;  %v5182_v54 = vld [vmem:[#allocation2 + $0x40] ss:$8 sps:$4 sm:$0xff]  }
 0x18f   : > { %4978 = vmatprep.subr.bf16.mxu1 %v5167_v28  ;;  %v3546_v52 = vshll.u32 %v6042_v35, 16  ;;  %v3618_v0 = vrot.slane %v3616_v34, 5  ;;  %v3808_v42 = vrot.slane %v6042_v35, 5 }
 0x190   : > { %4961 = vmatpush3.bf16.msra.mxu0 %v5168_v12  ;;  %v3571_v39 = vor.u32 %v3570_v1, %v3567_v14  ;;  %v3560_v12 = vshll.u32 %v6038_v22, 16 }
 0x191   : > { %4962 = vmatprep.subr.bf16.mxu0 %v5170_v53 }
 0x192   : > { %4979 = vmatpush3.bf16.msra.mxu1 %v5167_v28  ;;  %v3593_v28 = vshrl.u32 %v3504_v9, 16  ;;  %v3562_v37 = vrot.slane %v3560_v12, 5  ;;  %v3614_v9 = vrot.slane %v3613_v60, 4 }
 0x193   : > { %4980 = vmatprep.subr.bf16.mxu1 %v5169_v43 }
 0x194   : > { %4963 = vmatpush3.bf16.msra.mxu0 %v5170_v53  ;;  %v3595_v53 = vrot.slane %v3593_v28, 4  ;;  %v3563_v15 = vsel %vm5396_vm4, %v3558_v38, %v3562_v37  ;;  %v3776_v28 = vld [vmem:[#allocation2 + $0x20] sm:$0xe] }
 0x195   : > { %4949 = vmatmul.mubr.bf16.gmra.mxu1 %v4434_v55  ;;  %4964 = vmatprep.subr.bf16.mxu0 %v5172_v59  ;;  %v5183_v55 = vld [vmem:[%s6329_s3 + $0x228] sm:$0xff]   ;;  %v4501_v12 = vrot.slane %v3776_v28, 9 }
 0x196   : > { %4981 = vmatpush3.bf16.msra.mxu1 %v5169_v43  ;;  %4992 = vmatprep.mubr.bf16.mxu1 %v4487_v58  ;;  %v4499_v43 = vrot.slane %v3774_v27, 9  ;;  %v3572_v58 = vrot.slane %v3571_v39, 4  ;;  %v3778_v27 = vld [vmem:[#allocation2 + $0x30] sm:$0xe] }
 0x197   : > { %4982 = vmatprep.subr.bf16.mxu1 %v5171_v47  ;;  %v4503_v39 = vrot.slane %v3778_v27, 9 }
 0x198   : > { %4965 = vmatpush3.bf16.msra.mxu0 %v5172_v59  ;;  %v3544_v59 = vrot.slane %v3543_v24, 4  ;;  %v3801_v49 = vsel %vm5772_vm13, %v4499_v43, %v3800_v45  ;;  %v3816_v24 = vrot.slane %v6040_v2, 5  ;;  %v3781_v45 = vld [vmem:[#allocation2 + $0x48] sm:$0xe]  ;;  %v3809_v2 = vsel %vm5772_vm13, %v4501_v12, %v3808_v42 }
 0x199   : > { %4966 = vmatprep.subr.bf16.mxu0 %v5174_v61 }
 0x19a   : > { %4983 = vmatpush3.bf16.msra.mxu1 %v5171_v47  ;;  %v3804_v47 = vrot.slane %v5984_v21, 5  ;;  %v3548_v21 = vrot.slane %v3546_v52, 5  ;;  %v4506_v52 = vrot.slane %v3781_v45, 9 }
 0x19b   : > { %4984 = vmatprep.subr.bf16.mxu1 %v5173_v48 }
 0x19c   : > { %4967 = vmatpush3.bf16.msra.mxu0 %v5174_v61  ;;  %v3599_v61 = vor.u32 %v3598_v56, %v3595_v53  ;;  %v3805_v62 = vsel %vm5772_vm13, %v4500_v36, %v3804_v47  ;;  %v3549_v50 = vsel %vm5396_vm4, %v3544_v59, %v3548_v21  ;;  %v3828_v56 = vrot.slane %v6062_v29, 5 }
 0x19d   : > { %5000 = vmatprep.subr.bf16.mxu0 %v5177_v16  ;;  %v4523_v6 = vcombine.low %v3801_v49, %v3805_v62  ;;  %v4488_v5 = vcombine.low %v3549_v50, %v3563_v15 }
 0x19e   : > { %4985 = vmatpush3.bf16.msra.mxu1 %v5173_v48  ;;  %v3576_v48 = vrot.slane %v3574_v46, 5  ;;  %v3600_v1 = vrot.slane %v3599_v61, 4  ;;  %v3817_v46 = vsel %vm5772_vm13, %v4503_v39, %v3816_v24  ;;  %v3829_v36 = vsel %vm5772_vm13, %v4506_v52, %v3828_v56 }
 0x19f   : > { %4986 = vmatprep.subr.bf16.mxu1 %v5175_v10  ;;  %4969 = vmatmul.mubr.bf16.vlgmr.msra.gmra.mxu0 %v5176_v7  ;;  %v3812_v7 = vrot.slane %v6038_v22, 5  ;;  %v3780_v22 = vld [vmem:[#allocation2 + $0x40] sm:$0xe] }
 0x1a0   : > { %4972 = vmatprep.mubr.bf16.mxu0 %v5178_v32  ;;  %5001 = vmatpush3.bf16.msra.mxu0 %v5177_v16  ;;  %v3577_v63 = vsel %vm5396_vm4, %v3572_v58, %v3576_v48  ;;  %v3591_v16 = vsel %vm5396_vm4, %v3586_v57, %v3590_v30  ;;  %v3605_v18 = vsel %vm5396_vm4, %v3600_v1, %v3604_v25  ;;  %v3779_v32 = vld [vmem:[#allocation2 + $0x38] sm:$0xe]  ;;  %v4505_v53 = vrot.slane %v3780_v22, 9  ;;  %v4802_v58 = vpop.f32.mrf.mxu1 }
 0x1a1   : > { %5002 = vmatprep.subr.bf16.mxu0 %v5180_v19  ;;  %v4489_v14 = vcombine.low %v3577_v63, %v3591_v16  ;;  %v4504_v33 = vrot.slane %v3779_v32, 9  ;;  %v3813_v43 = vsel %vm5772_vm13, %v4502_v31, %v3812_v7 }
 0x1a2   : > { %4987 = vmatpush3.bf16.msra.mxu1 %v5175_v10  ;;  %v5184_v10 = vld [vmem:[%s6329_s3 + $0x220] sm:$0xff]   ;;  %v4524_v44 = vcombine.low %v3809_v2, %v3813_v43  ;;  %v1964_v20 = vpop.f32.mrf.mxu1 }
 0x1a3   : > { %4988 = vmatprep.subr.bf16.mxu1 %v5179_v51 }
 0x1a4   : > { %5003 = vmatpush3.bf16.msra.mxu0 %v5180_v19  ;;  %v5186_v19 = vld [vmem:[%s6329_s3 + $0x210] sm:$0xff]   ;;  %v6114_v59 = vpop.f32.mrf.mxu1 }
 0x1a5   : > { %5004 = vmatprep.subr.bf16.mxu0 %v5183_v55 }
 0x1a6   : > { %4989 = vmatpush3.bf16.msra.mxu1 %v5179_v51  ;;  %v3619_v51 = vsel %vm5396_vm4, %v3614_v9, %v3618_v0  ;;  %v6116_v37 = vpop.f32.mrf.mxu1 }
 0x1a7   : > { %4990 = vmatprep.subr.bf16.mxu1 %v5181_v41  ;;  %4973 = vmatmul.mubr.bf16.gmra.mxu0 %v5182_v54  ;;  %v4490_v23 = vcombine.low %v3605_v18, %v3619_v51 }
 0x1a8   : > { %5005 = vmatpush3.bf16.msra.mxu0 %v5183_v55  ;;  %5016 = vmatprep.mubr.bf16.mxu0 %v4523_v6  ;;  %v6118_v49 = vpop.f32.mrf.mxu1 }
 0x1a9   : > { %5006 = vmatprep.subr.bf16.mxu0 %v5184_v10 }
 0x1aa   : > { %4991 = vmatpush3.bf16.msra.mxu1 %v5181_v41  ;;  %v3820_v41 = vrot.slane %v6045_v4, 5  ;;  %v3824_v4 = vrot.slane %v6060_v8, 5  ;;  %v6120_v57 = vpop.f32.mrf.mxu1 }
 0x1ac   : > { %5007 = vmatpush3.bf16.msra.mxu0 %v5184_v10  ;;  %v3821_v35 = vsel %vm5772_vm13, %v4504_v33, %v3820_v41  ;;  %v3825_v55 = vsel %vm5772_vm13, %v4505_v53, %v3824_v4  ;;  %v6122_v29 = vpop.f32.mrf.mxu1 }
 0x1ad   : > { %4993 = vmatmul.mubr.bf16.vlgmr.msra.gmra.mxu1 %v4488_v5  ;;  %5008 = vmatprep.subr.bf16.mxu0 %v5185_v3  ;;  %v4525_v38 = vcombine.low %v3817_v46, %v3821_v35  ;;  %v4526_v47 = vcombine.low %v3825_v55, %v3829_v36 }
 0x1ae   : > { %4996 = vmatprep.mubr.bf16.mxu1 %v4489_v14  ;;  %v6126_v17 = vpop.f32.mrf.mxu1 }
 0x1b0   : > { %5009 = vmatpush3.bf16.msra.mxu0 %v5185_v3 }
 0x1b1   : > { %5010 = vmatprep.subr.bf16.mxu0 %v5186_v19 }
 0x1b4   : > { %5011 = vmatpush3.bf16.msra.mxu0 %v5186_v19 }
 0x1b5   : > { %4997 = vmatmul.mubr.bf16.gmra.mxu1 %v4490_v23  ;;  %5012 = vmatprep.subr.bf16.mxu0 %v5187_v13 }
 0x1b8   : > { %5013 = vmatpush3.bf16.msra.mxu0 %v5187_v13 }
 0x1b9   : > { %5014 = vmatprep.subr.bf16.mxu0 %v5188_v40 }
 0x1bc   : > { %5015 = vmatpush3.bf16.msra.mxu0 %v5188_v40 }
 0x1bf   : > { %5017 = vmatmul.mubr.bf16.vlgmr.msra.gmra.mxu0 %v4524_v44 }
 0x1c0   : > { %5020 = vmatprep.mubr.bf16.mxu0 %v4525_v38  ;;  %v4266_v38 = vld [vmem:[%s6332_s6] ss:$0 sm:$0xff] }
 0x1c1   : > { %v1973_v56 = vadd.f32 %v4802_v58, %v4266_v38 }
 0x1c7   : > { %5021 = vmatmul.mubr.bf16.gmra.mxu0 %v4526_v47  ;;  %v1965_v47 = vadd.f32 %v4266_v38, %v1964_v20 }
 0x1fe   : > { %v4826_v48 = vpop.f32.mrf.mxu0 }
 0x200   : > { %v2125_v8 = vpop.f32.mrf.mxu0 }
 0x202   : > { %v6124_v60 = vpop.f32.mrf.mxu0 }
 0x204   : > { %v6128_v21 = vpop.f32.mrf.mxu0 }
 0x20b   : > { %v6130_v61 = vpop.f32.mrf.mxu0 }
 0x20d   : > { %v4850_v15 = vpop.f32.mrf.mxu1  ;;  %v6132_v54 = vpop.f32.mrf.mxu0 }
 0x20f   : > { %v2407_v34 = vpop.f32.mrf.mxu1  ;;  %v6136_v63 = vpop.f32.mrf.mxu0 }
 0x211   : > { %v6134_v62 = vpop.f32.mrf.mxu1  ;;  %v6140_v10 = vpop.f32.mrf.mxu0 }
 0x213   : > { %v6138_v30 = vpop.f32.mrf.mxu1 }
 0x217   : > { %v6142_v50 = vpop.f32.mrf.mxu1 }
 0x219   : > { %v6144_v11 = vpop.f32.mrf.mxu1 }
 0x21b   : > { %v6146_v16 = vpop.f32.mrf.mxu1 }
 0x21d   : > { %v6148_v1 = vpop.f32.mrf.mxu1 }
 0x21f   : > { %v4874_v6 = vpop.f32.mrf.mxu0 }
 0x221   : > { %v2620_v5 = vpop.f32.mrf.mxu0 }
 0x223   : > { %v4875_v14 = vpop.f32.mrf.mxu0 }
 0x225   : > { %v6150_v9 = vpop.f32.mrf.mxu0 }
 0x227   : > { %v6152_v3 = vpop.f32.mrf.mxu0 }
 0x229   : > { %v6154_v18 = vpop.f32.mrf.mxu0 }
 0x22b   : > { %v6156_v19 = vpop.f32.mrf.mxu0 }
 0x22d   : > { %v4898_v0 = vpop.f32.mrf.mxu1  ;;  %v6160_v13 = vpop.f32.mrf.mxu0 }
 0x22e   : > { %6344 = vst [vmem:[#allocation6_spill] sm:$0xff] %v6160_v13 }
 0x22f   : > { %v2790_v25 = vpop.f32.mrf.mxu1 }
 0x231   : > { %v4899_v51 = vpop.f32.mrf.mxu1 }
 0x233   : > { %v6158_v23 = vpop.f32.mrf.mxu1 }
 0x235   : > { %v6162_v26 = vpop.f32.mrf.mxu1 }
 0x237   : > { %v6164_v40 = vpop.f32.mrf.mxu1 }
 0x239   : > { %v6166_v31 = vpop.f32.mrf.mxu1 }
 0x23a   : > { %6345 = vst [vmem:[#allocation7_spill] sm:$0xff] %v6166_v31  ;;  %v1968_v31 = vadd.f32 %v4266_v38, %v6116_v37 }
 0x23b   : > { %v6168_v32 = vpop.f32.mrf.mxu1 }
 0x23c   : > { %6346 = vst [vmem:[#allocation8_spill] sm:$0xff] %v6168_v32  ;;  %v1976_v32 = vadd.f32 %v6114_v59, %v4266_v38 }
 0x23e   : > { %v2159_v13 = vadd.f32 %v6124_v60, %v1976_v32 }
 0x23f   : > { %v4922_v27 = vpop.f32.mrf.mxu0 }
 0x241   : > { %v3072_v28 = vpop.f32.mrf.mxu0 }
 0x243   : > { %v4923_v7 = vpop.f32.mrf.mxu0 }
 0x245   : > { %v6170_v39 = vpop.f32.mrf.mxu0 }
 0x247   : > { %v6172_v12 = vpop.f32.mrf.mxu0 }
 0x249   : > { %v6174_v33 = vpop.f32.mrf.mxu0 }
 0x24a   : > { %6347 = vst [vmem:[#allocation9_spill] sm:$0xff] %v6174_v33  ;;  %v1989_v33 = vadd.f32 %v6118_v49, %v4266_v38 }
 0x24b   : > { %v6178_v43 = vpop.f32.mrf.mxu0 }
 0x24c   : > { %6348 = vst [vmem:[#allocation10_spill] sm:$0xff] %v6178_v43  ;;  %v2162_v49 = vadd.f32 %v6130_v61, %v1989_v33 }
 0x24d   : > { %v4946_v24 = vpop.f32.mrf.mxu1  ;;  %v6182_v46 = vpop.f32.mrf.mxu0 }
 0x24e   : > { %6349 = vst [vmem:[#allocation11_spill] sm:$0xff] %v6182_v46  ;;  %v2158_v46 = vadd.f32 %v4826_v48, %v1973_v56  ;;  %v2157_v48 = vadd.f32 %v6128_v21, %v1968_v31  ;;  %v2441_v56 = vadd.f32 %v6134_v62, %v2159_v13 }
 0x24f   : > { %v3282_v42 = vpop.f32.mrf.mxu1 }
 0x250   : > { %v2439_v37 = vadd.f32 %v6138_v30, %v2157_v48  ;;  %v2654_v60 = vadd.f32 %v4875_v14, %v2441_v56 }
 0x251   : > { %v6176_v41 = vpop.f32.mrf.mxu1 }
 0x253   : > { %v6180_v45 = vpop.f32.mrf.mxu1 }
 0x255   : > { %v6184_v22 = vpop.f32.mrf.mxu1 }
 0x256   : > { %6350 = vst [vmem:[#allocation12_spill] sm:$0xff] %v6184_v22  ;;  %v2440_v22 = vadd.f32 %v4850_v15, %v2158_v46  ;;  %v1992_v15 = vadd.f32 %v6122_v29, %v4266_v38  ;;  %v2444_v46 = vadd.f32 %v6142_v50, %v2162_v49 }
 0x257   : > { %v6186_v44 = vpop.f32.mrf.mxu1 }
 0x258   : > { %6351 = vst [vmem:[#allocation13_spill] sm:$0xff] %v6186_v44  ;;  %v2653_v58 = vadd.f32 %v4874_v6, %v2440_v22  ;;  %v2163_v30 = vadd.f32 %v6136_v63, %v1992_v15 }
 0x259   : > { %v6188_v52 = vpop.f32.mrf.mxu1 }
 0x25a   : > { %6352 = vst [vmem:[#allocation14_spill] sm:$0xff] %v6188_v52  ;;  %v2156_v52 = vadd.f32 %v2125_v8, %v1965_v47  ;;  %v2823_v8 = vadd.f32 %v4898_v0, %v2653_v58  ;;  %v2824_v0 = vadd.f32 %v4899_v51, %v2654_v60  ;;  %v2445_v31 = vadd.f32 %v6146_v16, %v2163_v30 }
 0x25b   : > { %v6195_v4 = vpop.f32.mrf.mxu1 }
 0x25c   : > { %6354 = vst [vmem:[#allocation16_spill] sm:$0xff] %v6195_v4  ;;  %v2438_v4 = vadd.f32 %v2407_v34, %v2156_v52  ;;  %v3105_v6 = vadd.f32 %v4922_v27, %v2823_v8  ;;  %v6359_v52 = vld [vmem:[#allocation9_spill] sm:$0xff]  ;;  %v6363_v8 = vld [vmem:[#allocation10_spill] sm:$0xff] }
 0x25e   : > { %v2651_v59 = vadd.f32 %v2620_v5, %v2438_v4  ;;  %v2652_v5 = vadd.f32 %v6150_v9, %v2439_v37  ;;  %v3315_v61 = vadd.f32 %v4946_v24, %v3105_v6 }
 0x25f   : > { %v4970_v2 = vpop.f32.mrf.mxu0  ;;  %v6364_v49 = vld [vmem:[#allocation13_spill] sm:$0xff] }
 0x260   : > { %v2821_v34 = vadd.f32 %v2790_v25, %v2651_v59  ;;  %v2657_v25 = vadd.f32 %v6152_v3, %v2444_v46  ;;  %v3486_v50 = vadd.f32 %v4970_v2, %v3315_v61  ;;  %v6357_v2 = vld [vmem:[#allocation6_spill] sm:$0xff] }
 0x261   : > { %v3453_v35 = vpop.f32.mrf.mxu0 }
 0x262   : > { %v3103_v29 = vadd.f32 %v3072_v28, %v2821_v34  ;;  %v2827_v51 = vadd.f32 %v6162_v26, %v2657_v25  ;;  %v6237_v26 = vld [vmem:[%s6330_s4] ss:$0 sm:$0xff] }
 0x263   : > { %v6193_v53 = vpop.f32.mrf.mxu0 }
 0x264   : > { %6353 = vst [vmem:[#allocation15_spill] sm:$0xff] %v6193_v53  ;;  %v3313_v13 = vadd.f32 %v3282_v42, %v3103_v29 }
 0x265   : > { %v6197_v55 = vpop.f32.mrf.mxu0 }
 0x266   : > { %6355 = vst [vmem:[#allocation17_spill] sm:$0xff] %v6197_v55  ;;  %v1981_v55 = vadd.f32 %v4266_v38, %v6120_v57  ;;  %v1984_v57 = vadd.f32 %v4266_v38, %v6126_v17  ;;  %v2822_v17 = vadd.f32 %v6158_v23, %v2652_v5  ;;  %v3484_v23 = vadd.f32 %v3453_v35, %v3313_v13  ;;  %v6358_v35 = vld [vmem:[#allocation7_spill] sm:$0xff]  ;;  %v6360_v38 = vld [vmem:[#allocation12_spill] sm:$0xff] }
 0x267   : > { %v6199_v43 = vpop.f32.mrf.mxu0  ;;  %v6365_v5 = vld [vmem:[#allocation11_spill] sm:$0xff] }
 0x268   : > { %v2160_v32 = vadd.f32 %v6132_v54, %v1981_v55  ;;  %v3106_v54 = vadd.f32 %v4923_v7, %v2824_v0  ;;  %v2161_v27 = vadd.f32 %v6140_v10, %v1984_v57  ;;  %v2658_v10 = vadd.f32 %v6156_v19, %v2445_v31 }
 0x269   : > { %v6206_v53 = vpop.f32.mrf.mxu0 }
 0x26a   : > { %v2442_v14 = vadd.f32 %v6144_v11, %v2160_v32  ;;  %v3104_v11 = vadd.f32 %v6170_v39, %v2822_v17  ;;  %v3316_v3 = vadd.f32 %v6176_v41, %v3106_v54  ;;  %v2443_v24 = vadd.f32 %v6148_v1, %v2161_v27  ;;  %v6367_v54 = vld [vmem:[#allocation16_spill] sm:$0xff] }
 0x26b   : > { %v6216_v21 = vpop.f32.mrf.mxu0  ;;  %v6356_v33 = vld [vmem:[#allocation15_spill] sm:$0xff] }
 0x26c   : > { %v2655_v9 = vadd.f32 %v6154_v18, %v2442_v14  ;;  %v3109_v18 = vadd.f32 %v6172_v12, %v2827_v51  ;;  %v3314_v39 = vadd.f32 %v6180_v45, %v3104_v11  ;;  %v3487_v41 = vadd.f32 %v6356_v33, %v3316_v3 }
 0x26d   : > { %v4994_v36 = vpop.f32.mrf.mxu1  ;;  %v3472_v28 = vpop.f32.mrf.mxu0  ;;  %v2656_v19 = vadd.f32 %v6357_v2, %v2443_v24  ;;  %v6361_v47 = vld [vmem:[#allocation17_spill] sm:$0xff] }
 0x26e   : > { %v3768_v7 = vadd.f32 %v4994_v36, %v3486_v50  ;;  %v2825_v16 = vadd.f32 %v6164_v40, %v2655_v9  ;;  %v2828_v40 = vadd.f32 %v6358_v35, %v2658_v10  ;;  %v3319_v4 = vadd.f32 %v6360_v38, %v3109_v18 }
 0x26f   : > { %v3735_v44 = vpop.f32.mrf.mxu1  ;;  %v3485_v58 = vadd.f32 %v6361_v47, %v3314_v39 }
 0x270   : > { %v3766_v22 = vadd.f32 %v3735_v44, %v3484_v23  ;;  %v3107_v12 = vadd.f32 %v6359_v52, %v2825_v16  ;;  %v6362_v44 = vld [vmem:[#allocation8_spill] sm:$0xff]  ;;  %v3110_v15 = vadd.f32 %v6363_v8, %v2828_v40  ;;  %v3490_v60 = vadd.f32 %v6199_v43, %v3319_v4 }
 0x271   : > { %v4995_v20 = vpop.f32.mrf.mxu1  ;;  %v2826_v59 = vadd.f32 %v6362_v44, %v2656_v19 }
 0x272   : > { %v3769_v48 = vadd.f32 %v4995_v20, %v3487_v41  ;;  %v3317_v37 = vadd.f32 %v6364_v49, %v3107_v12  ;;  %v6366_v20 = vld [vmem:[#allocation14_spill] sm:$0xff] }
 0x273   : > { %v3738_v62 = vpop.f32.mrf.mxu1  ;;  %v3108_v0 = vadd.f32 %v6365_v5, %v2826_v59  ;;  %v3320_v29 = vadd.f32 %v6366_v20, %v3110_v15 }
 0x274   : > { %v3767_v6 = vadd.f32 %v3738_v62, %v3485_v58  ;;  %v3488_v61 = vadd.f32 %v6206_v53, %v3317_v37 }
 0x275   : > { %v4998_v63 = vpop.f32.mrf.mxu1  ;;  %v3318_v13 = vadd.f32 %v6367_v54, %v3108_v0  ;;  %v3491_v50 = vadd.f32 %v6216_v21, %v3320_v29 }
 0x276   : > { %v3772_v25 = vadd.f32 %v4998_v63, %v3490_v60 }
 0x277   : > { %v3751_v55 = vpop.f32.mrf.mxu1  ;;  %v3489_v63 = vadd.f32 %v3472_v28, %v3318_v13 }
 0x278   : > { %v3770_v53 = vadd.f32 %v3751_v55, %v3488_v61 }
 0x279   : > { %v4999_v30 = vpop.f32.mrf.mxu1 }
 0x27a   : > { %v3773_v23 = vadd.f32 %v4999_v30, %v3491_v50 }
 0x27b   : > { %v3754_v11 = vpop.f32.mrf.mxu1 }
 0x27c   : > { %v3771_v16 = vadd.f32 %v3754_v11, %v3489_v63 }
 0x27f   : > { %v5018_v42 = vpop.f32.mrf.mxu0 }
 0x280   : > { %v3978_v1 = vadd.f32 %v5018_v42, %v3768_v7 }
 0x281   : > { %v3945_v36 = vpop.f32.mrf.mxu0 }
 0x282   : > { %v3993_v45 = vadd.f32 %v6237_v26, %v3978_v1  ;;  %v3976_v56 = vadd.f32 %v3945_v36, %v3766_v22 }
 0x283   : > { %v5019_v34 = vpop.f32.mrf.mxu0 }
 0x284   : > { %v4001_v57 = vmax.f32 %v3993_v45, 0.0  ;;  %v3991_v32 = vadd.f32 %v6237_v26, %v3976_v56  ;;  %v3979_v46 = vadd.f32 %v5019_v34, %v3769_v48 }
 0x285   : > { %v3948_v14 = vpop.f32.mrf.mxu0 }
 0x286   : > { %4009 = vst [vmem:[%s6257_s29 + $0x10] sm:$0xff] %v4001_v57  ;;  %v3999_v43 = vmax.f32 %v3991_v32, 0.0  ;;  %v3994_v62 = vadd.f32 %v6237_v26, %v3979_v46  ;;  %v3977_v17 = vadd.f32 %v3948_v14, %v3767_v6 }
 0x287   : > { %v5022_v27 = vpop.f32.mrf.mxu0 }
 0x288   : > { %4007 = vst [vmem:[%s6257_s29] sm:$0xff] %v3999_v43  ;;  %v4002_v31 = vmax.f32 %v3994_v62, 0.0  ;;  %v3992_v9 = vadd.f32 %v6237_v26, %v3977_v17  ;;  %v3982_v51 = vadd.f32 %v5022_v27, %v3772_v25 }
 0x289   : > { %v3961_v3 = vpop.f32.mrf.mxu0 }
 0x28a   : > { %4010 = vst [vmem:[%s6257_s29 + $0x18] sm:$0xff] %v4002_v31  ;;  %v4000_v7 = vmax.f32 %v3992_v9, 0.0  ;;  %v3997_v21 = vadd.f32 %v6237_v26, %v3982_v51  ;;  %v3980_v24 = vadd.f32 %v3961_v3, %v3770_v53 }
 0x28b   : > { %v5023_v10 = vpop.f32.mrf.mxu0 }
 0x28c   : > { %4008 = vst [vmem:[%s6257_s29 + $0x8] sm:$0xff] %v4000_v7  ;;  %v4005_v18 = vmax.f32 %v3997_v21, 0.0  ;;  %v3995_v42 = vadd.f32 %v6237_v26, %v3980_v24  ;;  %v3983_v28 = vadd.f32 %v5023_v10, %v3773_v23 }
 0x28d   : > { %v3964_v39 = vpop.f32.mrf.mxu0 }
 0x28e   : > { %4013 = vst [vmem:[%s6257_s29 + $0x30] sm:$0xff] %v4005_v18  ;;  %v4003_v33 = vmax.f32 %v3995_v42, 0.0  ;;  %v3998_v41 = vadd.f32 %v6237_v26, %v3983_v28  ;;  %v3981_v22 = vadd.f32 %v3964_v39, %v3771_v16 }
 0x290   : > { %4011 = vst [vmem:[%s6257_s29 + $0x20] sm:$0xff] %v4003_v33  ;;  %v4006_v1 = vmax.f32 %v3998_v41, 0.0  ;;  %v3996_v2 = vadd.f32 %v6237_v26, %v3981_v22 }
 0x292   : > { %4014 = vst [vmem:[%s6257_s29 + $0x38] sm:$0xff] %v4006_v1  ;;  %v4004_v19 = vmax.f32 %v3996_v2, 0.0 }
 0x294   : > { %4012 = vst [vmem:[%s6257_s29 + $0x28] sm:$0xff] %v4004_v19 }
 0x295   : > { %5202 = shalt.err (!%p5199_p3)
}
 0x296   : > { %s5203_s8 = scalar_lea.hbm %s6278_s16, 1024  ;;  %s5207_s23 = scalar_lea.hbm %s6333_s7, 2048 }
 0x297   : > { %p5204_p4 = scmp.ne.s32.totalorder %s6278_s16, %s5203_s8  ;;  %p5208_p9 = scmp.lt.s32.totalorder %s6278_s16, %s6333_s7 }
 0x298   : > { %p5209_p10 = scmp.lt.s32.totalorder %s5207_s23, %s5203_s8 }
 0x299   : > { %p5205_p7 = pnand %p5204_p4, %p5333_p5 }
 0x29a   : > { %p5210_p11 = por %p5209_p10, %p5208_p9 }
 0x29b   : > { %p5206_p8 = pneg %p5205_p7 }
 0x29d   : > { %p5211_p12 = pnand %p5210_p11, %p5206_p8 }
 0x29f   : > { %5214 = shalt.err (!%p5211_p12)
}
 0x2a0   : > { %s5253_s14 = smov 128   ;;  %s5254_s15 = smov 8  }
 0x2a1   : > { %5035 = dma.vmem_to_hbm [thread:$0]  (%p5333_p5), %s6280_s13, 1024, %s6278_s16, %s6286_s28, %s5253_s14, %s5253_s14, %s5254_s15  }
 0x2a2 PF: > { %p5041_p13 = scmp.ge.s32.totalorder %s5249_s27, 2  ;;  %s4044_s17 = sand.u32 1, %s5237_s24  }
 0x2a3   : > { %s4045_s18 = scalar_lea.sflag [#allocation4], %s4044_s17 }
 0x2a4   : > { %p5038_p0 = pnand %p5041_p13, %p5337_p6 }
 0x2a6   : > { %p5039_p1 = pneg %p5038_p0 }
 0x2a8   : > { %5232 = dma.done.wait (%p5039_p1), %s4045_s18, 1024  }
 0x2a9   : > { %5234 = vsyncadd (%p5039_p1), %s4045_s18, 4294966272  ;;  %p17_p2 = scmp.ge.s32.totalorder %s5320_s30, 4   ;;  %s6368_s24 = smov %s5241_s25 }
 0x2aa   : > { %s6369_s25 = smov %s5245_s26  ;;  %s6370_s26 = smov %s5331_s10 }
 0x2ab   : > { %s6371_s27 = smov %s5320_s30  ;;  %19 = sbr.rel (!%p17_p2) target bundleno = 3 (0x3), region = 106 }
 0x2b0   :  { %4050 = vsyncpa [#allocation4], 1 }
 0x2b1   :  { %4052 = vsyncpa [#allocation4 + $0x1], 1 }

</bundles_post_ra>
